<compile_context>
chip_gen: v7x
topology: tpu7x:2x2x1
jax: 0.10.0
libtpu: 0.0.40
codegen_flags: <defaults>
</compile_context>

<pallas_src>
import functools

import jax
import jax.numpy as jnp
import numpy as np
from jax.experimental import pallas as pl
from jax.experimental.pallas import tpu as pltpu


def ggnn_kernel(x_ref, a_ref, mask_ref, w_ref, wall_ref, b_ref, gw_ref, gb_ref,
                out_ref, *, num_layers, d_pad):
    """One graph per grid step; the whole (padded) graph lives in VMEM."""
    Dp = d_pad
    x = x_ref[0]                       # [Np, Dp]  f32 node states (padded lanes = 0)
    A = a_ref[0]                       # [Np, Np]  bf16 dense adjacency A[dst, src]
    mask = mask_ref[0]                 # [Np, 1]   f32 (1.0 real node, 0.0 padding)
    n_nodes = x.shape[0]

    # --- hoisted, loop-invariant loads & broadcasts (read/built once) ---
    wall = wall_ref[...]               # [2*Dp, 4*Dp] bf16 fused GRU gate weights
    b = b_ref[...]                     # [4, Dp] f32
    shp = (n_nodes, Dp)
    b_r = jnp.broadcast_to(b[0:1, :], shp)
    b_z = jnp.broadcast_to(b[1:2, :], shp)
    b_in = jnp.broadcast_to(b[2:3, :], shp)
    b_hn = jnp.broadcast_to(b[3:4, :], shp)
    gw = gw_ref[...]                   # [1, Dp] f32 attention gate weight row

    for layer in range(num_layers):    # static unroll; w_ref[layer] is a static index
        x_b = x.astype(jnp.bfloat16)
        # linear transform of node states, then weighted neighbor aggregation (MXU)
        m = jnp.dot(x_b, w_ref[layer], preferred_element_type=jnp.float32)      # [Np, Dp]
        m = jnp.dot(A, m.astype(jnp.bfloat16), preferred_element_type=jnp.float32)

        # single fused MXU matmul for all GRU gate pre-activations
        mx = jnp.concatenate([m.astype(jnp.bfloat16), x_b], axis=1)             # [Np, 2*Dp]
        g = jnp.dot(mx, wall, preferred_element_type=jnp.float32)               # [Np, 4*Dp]

        r = jax.nn.sigmoid(g[:, 0:Dp] + b_r)            # gi_r + gh_r + (b_ir + b_hr)
        z = jax.nn.sigmoid(g[:, Dp:2 * Dp] + b_z)       # gi_z + gh_z + (b_iz + b_hz)
        n = jnp.tanh(g[:, 2 * Dp:3 * Dp] + b_in + r * (g[:, 3 * Dp:4 * Dp] + b_hn))
        x = (1.0 - z) * n + z * x

    # GlobalAttention pooling over this graph's real nodes (mask out padding).
    logits = jnp.sum(x * gw, axis=-1, keepdims=True) + gb_ref[0]                # [Np, 1]
    gate = jax.nn.sigmoid(logits)
    gate = jnp.where(mask > 0.0, gate, jnp.float32(-1e30))
    gate = gate - jnp.max(gate, axis=0, keepdims=True)
    e = jnp.exp(gate) * mask
    s = e * pl.reciprocal(jnp.sum(e, axis=0, keepdims=True), approx=True)       # softmax over nodes
    out_ref[0] = jnp.sum(s * x, axis=0, keepdims=True)                          # [1, Dp]


def ggnn_forward_batched(graphs, params, num_layers, *, n_pad=16, d_pad=128):
    """graphs: list of dicts with 'node_ids' [n], 'edges' [2,E], 'edge_types' [E]."""
    embed = params['embed']            # [V, D]
    edge_embed = params['edge_embed']  # [7, D]
    D = embed.shape[1]
    L = num_layers
    Dp, Np = d_pad, n_pad
    G = len(graphs)

    # --- glue (plain JAX): embedding lookups, dense adjacency, padding ---
    x0s, As, masks = [], [], []
    for gr in graphs:
        nid, edges, etypes = gr['node_ids'], gr['edges'], gr['edge_types']
        n = nid.shape[0]
        x0 = jnp.take(embed, nid, axis=0).astype(jnp.float32)                  # [n, D]
        ew = jnp.take(edge_embed, etypes - 1, axis=0).mean(axis=1)             # [E]
        src, dst = edges[0], edges[1]
        A = jnp.zeros((Np, Np), jnp.float32).at[dst, src].add(ew)              # [Np, Np]
        x0p = jnp.zeros((Np, Dp), jnp.float32).at[:n, :D].set(x0)
        msk = jnp.zeros((Np, 1), jnp.float32).at[:n, :].set(1.0)
        x0s.append(x0p)
        As.append(A.astype(jnp.bfloat16))
        masks.append(msk)
    x0s = jnp.stack(x0s)                                                       # [G, Np, Dp]
    As = jnp.stack(As)                                                         # [G, Np, Np] bf16
    masks = jnp.stack(masks)                                                   # [G, Np, 1]

    # GGNN per-layer transforms, zero-padded to Dp lanes (bf16 MXU operands).
    W = jnp.zeros((L, Dp, Dp), jnp.float32).at[:, :D, :D].set(params['ggnn_w'])
    W = W.astype(jnp.bfloat16)

    # Fused GRU gate weight: [m | x] @ W_all -> [rz_r | rz_z | gi_n | gh_n].
    wih_t, whh_t = params['gru_wih_t'], params['gru_whh_t']                    # [D, 3D] each
    W_all = jnp.zeros((2 * Dp, 4 * Dp), jnp.float32)
    W_all = W_all.at[0:D, 0:D].set(wih_t[:, 0:D])                    # r from m
    W_all = W_all.at[Dp:Dp + D, 0:D].set(whh_t[:, 0:D])              # r from x
    W_all = W_all.at[0:D, Dp:Dp + D].set(wih_t[:, D:2 * D])          # z from m
    W_all = W_all.at[Dp:Dp + D, Dp:Dp + D].set(whh_t[:, D:2 * D])    # z from x
    W_all = W_all.at[0:D, 2 * Dp:2 * Dp + D].set(wih_t[:, 2 * D:])   # gi_n from m
    W_all = W_all.at[Dp:Dp + D, 3 * Dp:3 * Dp + D].set(whh_t[:, 2 * D:])  # gh_n from x
    W_all = W_all.astype(jnp.bfloat16)

    # GRU biases (r/z pre-combined), zero-padded, kept f32.
    bih, bhh = params['gru_bih'], params['gru_bhh']                            # [3D] each
    gru_b = jnp.zeros((4, Dp), jnp.float32)
    gru_b = gru_b.at[0, :D].set(bih[:D] + bhh[:D])                   # b_r
    gru_b = gru_b.at[1, :D].set(bih[D:2 * D] + bhh[D:2 * D])         # b_z
    gru_b = gru_b.at[2, :D].set(bih[2 * D:])                         # b_in
    gru_b = gru_b.at[3, :D].set(bhh[2 * D:])                         # b_hn

    gw_row = jnp.zeros((1, Dp), jnp.float32).at[0, :D].set(params['gate_w'][:, 0])
    gb = params['gate_b'].reshape(1).astype(jnp.float32)             # scalar -> SMEM

    kernel = functools.partial(ggnn_kernel, num_layers=L, d_pad=Dp)

    # Advisory cost estimate (per graph, times G).
    flops = G * (L * (2 * Np * Dp * Dp + 2 * Np * Np * Dp + 2 * Np * (2 * Dp) * (4 * Dp))
                 + 2 * Np * Dp)
    transcendentals = G * (L * 3 * Np * Dp + 2 * Np)

    def _nbytes(a):
        return int(np.prod(a.shape)) * a.dtype.itemsize

    bytes_accessed = (sum(_nbytes(a) for a in
                          (x0s, As, masks, W, W_all, gru_b, gw_row, gb))
                      + G * Dp * 4)

    hg = pl.pallas_call(
        kernel,
        out_shape=jax.ShapeDtypeStruct((G, 1, Dp), jnp.float32),
        grid=(G,),
        in_specs=[
            pl.BlockSpec((1, Np, Dp), lambda g: (g, 0, 0)),          # x0 per graph
            pl.BlockSpec((1, Np, Np), lambda g: (g, 0, 0)),          # A per graph (bf16)
            pl.BlockSpec((1, Np, 1), lambda g: (g, 0, 0)),           # node mask per graph
            pl.BlockSpec((L, Dp, Dp), lambda g: (0, 0, 0)),          # per-layer W (resident)
            pl.BlockSpec((2 * Dp, 4 * Dp), lambda g: (0, 0)),        # fused GRU gate weights
            pl.BlockSpec((4, Dp), lambda g: (0, 0)),                 # GRU biases
            pl.BlockSpec((1, Dp), lambda g: (0, 0)),                 # attention gate weight row
            pl.BlockSpec(memory_space=pltpu.MemorySpace.SMEM),       # gate bias scalar
        ],
        out_specs=pl.BlockSpec((1, 1, Dp), lambda g: (g, 0, 0)),
        compiler_params=pltpu.CompilerParams(
            dimension_semantics=("parallel",)),
        cost_estimate=pl.CostEstimate(
            flops=flops, transcendentals=transcendentals,
            bytes_accessed=bytes_accessed),
    )(x0s, As, masks, W, W_all, gru_b, gw_row, gb)

    return hg[:, 0, :D]                                              # [G, D]


def ggnn_forward_ref(node_ids, edges, edge_types, params, num_layers):
    """Pure-JAX f32 reference (single graph) for correctness checking."""
    embed, edge_embed = params['embed'], params['edge_embed']
    D = embed.shape[1]
    x = jnp.take(embed, node_ids, axis=0).astype(jnp.float32)
    ew = jnp.take(edge_embed, edge_types - 1, axis=0).mean(axis=1)
    N = x.shape[0]
    src, dst = edges[0], edges[1]
    A = jnp.zeros((N, N), jnp.float32).at[dst, src].add(ew)
    wih, whh = params['gru_wih_t'], params['gru_whh_t']
    bih, bhh = params['gru_bih'], params['gru_bhh']
    for layer in range(num_layers):
        m = A @ (x @ params['ggnn_w'][layer])
        gi = m @ wih + bih
        gh = x @ whh + bhh
        r = jax.nn.sigmoid(gi[:, :D] + gh[:, :D])
        z = jax.nn.sigmoid(gi[:, D:2 * D] + gh[:, D:2 * D])
        n = jnp.tanh(gi[:, 2 * D:] + r * gh[:, 2 * D:])
        x = (1.0 - z) * n + z * x
    gate = jax.nn.sigmoid(x @ params['gate_w'] + params['gate_b'])
    s = jax.nn.softmax(gate, axis=0)
    return jnp.sum(s * x, axis=0)


if __name__ == "__main__":
    vocablen, D, L = 50, 32, 4          # embedding_dim=32, num_layers=4
    G, N_pad, E = 4, 16, 24             # 4 small synthetic graphs, padded to 16 nodes
    n_nodes_list = [16, 12, 10, 14]

    key = jax.random.PRNGKey(0)
    ks = jax.random.split(key, 8)

    params = {
        'embed':      jax.random.normal(ks[0], (vocablen, D), jnp.float32) * 0.1,
        'edge_embed': jax.random.normal(ks[1], (7, D), jnp.float32) * 0.1,
        'ggnn_w':     jax.random.normal(ks[2], (L, D, D), jnp.float32) * 0.1,
        'gru_wih_t':  jax.random.normal(ks[3], (D, 3 * D), jnp.float32) * 0.1,
        'gru_whh_t':  jax.random.normal(ks[4], (D, 3 * D), jnp.float32) * 0.1,
        'gru_bih':    jax.random.normal(ks[5], (3 * D,), jnp.float32) * 0.1,
        'gru_bhh':    jax.random.normal(ks[6], (3 * D,), jnp.float32) * 0.1,
        'gate_w':     jax.random.normal(ks[7], (D, 1), jnp.float32) * 0.1,
        'gate_b':     jnp.zeros((1,), jnp.float32),
    }

    graphs = []
    for i in range(G):
        gk = jax.random.fold_in(key, 100 + i)
        k1, k2, k3 = jax.random.split(gk, 3)
        n = n_nodes_list[i]
        graphs.append({
            'node_ids':   jax.random.randint(k1, (n,), 0, vocablen, dtype=jnp.int32),
            'edges':      jax.random.randint(k2, (2, E), 0, n, dtype=jnp.int32),
            'edge_types': jax.random.randint(k3, (E,), 1, 8, dtype=jnp.int32),
        })

    hg = jax.block_until_ready(
        ggnn_forward_batched(graphs, params, L, n_pad=N_pad, d_pad=128))
    assert hg.shape == (G, D)

    for i, gr in enumerate(graphs):
        ref = jax.block_until_ready(
            ggnn_forward_ref(gr['node_ids'], gr['edges'], gr['edge_types'], params, L))
        # bf16 MXU operands (x, A, W) vs f32 reference -> slightly relaxed tolerance.
        np.testing.assert_allclose(np.asarray(hg[i]), np.asarray(ref),
                                   rtol=2e-2, atol=2e-2)

    print("KERNEL_OK")
</pallas_src>

<mosaic_0001>
module attributes {stable_mosaic.version = 11 : i64} {
  func.func @ggnn_kernel(%arg0: i32, %arg1: memref<1x16x128xf32, #tpu.memory_space<vmem>>, %arg2: memref<1x16x16xbf16, #tpu.memory_space<vmem>>, %arg3: memref<1x16x1xf32, #tpu.memory_space<vmem>>, %arg4: memref<4x128x128xbf16, #tpu.memory_space<vmem>>, %arg5: memref<256x512xbf16, #tpu.memory_space<vmem>>, %arg6: memref<4x128xf32, #tpu.memory_space<vmem>>, %arg7: memref<1x128xf32, #tpu.memory_space<vmem>>, %arg8: memref<1xf32, #tpu.memory_space<smem>>, %arg9: memref<1x1x128xf32, #tpu.memory_space<vmem>>) attributes {dimension_semantics = [#tpu.dimension_semantics<parallel>], iteration_bounds = array<i64: 4>, scalar_prefetch = 0 : i64, scratch_operands = 0 : i64, tpu.core_type = #tpu.core_type<tc>, window_params = [{transform_indices = @transform_0, window_bounds = array<i64: 1, 16, 128>}, {transform_indices = @transform_1, window_bounds = array<i64: 1, 16, 16>}, {transform_indices = @transform_2, window_bounds = array<i64: 1, 16, 1>}, {pipeline_mode = #tpu.pipeline_mode<synchronous>, transform_indices = @transform_3, window_bounds = array<i64: 4, 128, 128>}, {pipeline_mode = #tpu.pipeline_mode<synchronous>, transform_indices = @transform_4, window_bounds = array<i64: 256, 512>}, {pipeline_mode = #tpu.pipeline_mode<synchronous>, transform_indices = @transform_5, window_bounds = array<i64: 4, 128>}, {pipeline_mode = #tpu.pipeline_mode<synchronous>, transform_indices = @transform_6, window_bounds = array<i64: 1, 128>}, {transform_indices = @transform_7, window_bounds = array<i64: 1>}, {transform_indices = @transform_8, window_bounds = array<i64: 1, 1, 128>}]} {
    %c0 = arith.constant 0 : index
    %c0_0 = arith.constant 0 : index
    %c0_1 = arith.constant 0 : index
    %0 = vector.load %arg1[%c0, %c0_0, %c0_1] : memref<1x16x128xf32, #tpu.memory_space<vmem>>, vector<1x16x128xf32>
    %1 = vector.shape_cast %0 : vector<1x16x128xf32> to vector<16x128xf32>
    %c0_2 = arith.constant 0 : index
    %c0_3 = arith.constant 0 : index
    %c0_4 = arith.constant 0 : index
    %2 = vector.load %arg2[%c0_2, %c0_3, %c0_4] : memref<1x16x16xbf16, #tpu.memory_space<vmem>>, vector<1x16x16xbf16>
    %3 = vector.shape_cast %2 : vector<1x16x16xbf16> to vector<16x16xbf16>
    %c0_5 = arith.constant 0 : index
    %c0_6 = arith.constant 0 : index
    %c0_7 = arith.constant 0 : index
    %4 = vector.load %arg3[%c0_5, %c0_6, %c0_7] : memref<1x16x1xf32, #tpu.memory_space<vmem>>, vector<1x16x1xf32>
    %5 = vector.shape_cast %4 : vector<1x16x1xf32> to vector<16x1xf32>
    %c0_8 = arith.constant 0 : index
    %c0_9 = arith.constant 0 : index
    %6 = vector.load %arg5[%c0_8, %c0_9] : memref<256x512xbf16, #tpu.memory_space<vmem>>, vector<256x512xbf16>
    %c0_10 = arith.constant 0 : index
    %c0_11 = arith.constant 0 : index
    %7 = vector.load %arg6[%c0_10, %c0_11] : memref<4x128xf32, #tpu.memory_space<vmem>>, vector<4x128xf32>
    %8 = vector.extract_strided_slice %7 {offsets = [0, 0], sizes = [1, 128], strides = [1, 1]} : vector<4x128xf32> to vector<1x128xf32>
    %9 = vector.shape_cast %8 : vector<1x128xf32> to vector<1x128xf32>
    %10 = vector.broadcast %9 : vector<1x128xf32> to vector<16x128xf32>
    %11 = vector.extract_strided_slice %7 {offsets = [1, 0], sizes = [1, 128], strides = [1, 1]} : vector<4x128xf32> to vector<1x128xf32>
    %12 = vector.shape_cast %11 : vector<1x128xf32> to vector<1x128xf32>
    %13 = vector.broadcast %12 : vector<1x128xf32> to vector<16x128xf32>
    %14 = vector.extract_strided_slice %7 {offsets = [2, 0], sizes = [1, 128], strides = [1, 1]} : vector<4x128xf32> to vector<1x128xf32>
    %15 = vector.shape_cast %14 : vector<1x128xf32> to vector<1x128xf32>
    %16 = vector.broadcast %15 : vector<1x128xf32> to vector<16x128xf32>
    %17 = vector.extract_strided_slice %7 {offsets = [3, 0], sizes = [1, 128], strides = [1, 1]} : vector<4x128xf32> to vector<1x128xf32>
    %18 = vector.shape_cast %17 : vector<1x128xf32> to vector<1x128xf32>
    %19 = vector.broadcast %18 : vector<1x128xf32> to vector<16x128xf32>
    %c0_12 = arith.constant 0 : index
    %c0_13 = arith.constant 0 : index
    %20 = vector.load %arg7[%c0_12, %c0_13] : memref<1x128xf32, #tpu.memory_space<vmem>>, vector<1x128xf32>
    %21 = arith.truncf %1 : vector<16x128xf32> to vector<16x128xbf16>
    %c0_14 = arith.constant 0 : index
    %c0_15 = arith.constant 0 : index
    %c0_16 = arith.constant 0 : index
    %22 = vector.load %arg4[%c0_14, %c0_15, %c0_16] : memref<4x128x128xbf16, #tpu.memory_space<vmem>>, vector<1x128x128xbf16>
    %23 = vector.shape_cast %22 : vector<1x128x128xbf16> to vector<128x128xbf16>
    %cst = arith.constant dense<0.000000e+00> : vector<16x128xf32>
    %24 = tpu.matmul %21, %23, %cst {dimension_numbers = #tpu.dot_dimension_numbers<[1], [0], [0], [1], [0, 0, 1, 1], [], []>} : vector<16x128xbf16>, vector<128x128xbf16>, vector<16x128xf32> -> vector<16x128xf32>
    %25 = arith.truncf %24 : vector<16x128xf32> to vector<16x128xbf16>
    %cst_17 = arith.constant dense<0.000000e+00> : vector<16x128xf32>
    %26 = tpu.matmul %3, %25, %cst_17 {dimension_numbers = #tpu.dot_dimension_numbers<[1], [0], [0], [1], [0, 0, 1, 1], [], []>} : vector<16x16xbf16>, vector<16x128xbf16>, vector<16x128xf32> -> vector<16x128xf32>
    %27 = arith.truncf %26 : vector<16x128xf32> to vector<16x128xbf16>
    %28 = tpu.concatenate %27, %21 in 1 : vector<16x128xbf16>, vector<16x128xbf16> -> vector<16x256xbf16>
    %cst_18 = arith.constant dense<0.000000e+00> : vector<16x512xf32>
    %29 = tpu.matmul %28, %6, %cst_18 {dimension_numbers = #tpu.dot_dimension_numbers<[1], [0], [0], [1], [0, 0, 1, 1], [], []>} : vector<16x256xbf16>, vector<256x512xbf16>, vector<16x512xf32> -> vector<16x512xf32>
    %30 = vector.extract_strided_slice %29 {offsets = [0, 0], sizes = [16, 128], strides = [1, 1]} : vector<16x512xf32> to vector<16x128xf32>
    %31 = arith.addf %30, %10 : vector<16x128xf32>
    %32 = arith.negf %31 : vector<16x128xf32>
    %33 = math.exp %32 : vector<16x128xf32>
    %cst_19 = arith.constant 1.000000e+00 : f32
    %34 = vector.broadcast %cst_19 : f32 to vector<16x128xf32>
    %35 = arith.addf %34, %33 : vector<16x128xf32>
    %36 = arith.divf %34, %35 : vector<16x128xf32>
    %37 = vector.extract_strided_slice %29 {offsets = [0, 128], sizes = [16, 128], strides = [1, 1]} : vector<16x512xf32> to vector<16x128xf32>
    %38 = arith.addf %37, %13 : vector<16x128xf32>
    %39 = arith.negf %38 : vector<16x128xf32>
    %40 = math.exp %39 : vector<16x128xf32>
    %cst_20 = arith.constant 1.000000e+00 : f32
    %41 = vector.broadcast %cst_20 : f32 to vector<16x128xf32>
    %42 = arith.addf %41, %40 : vector<16x128xf32>
    %43 = arith.divf %41, %42 : vector<16x128xf32>
    %44 = vector.extract_strided_slice %29 {offsets = [0, 256], sizes = [16, 128], strides = [1, 1]} : vector<16x512xf32> to vector<16x128xf32>
    %45 = arith.addf %44, %16 : vector<16x128xf32>
    %46 = vector.extract_strided_slice %29 {offsets = [0, 384], sizes = [16, 128], strides = [1, 1]} : vector<16x512xf32> to vector<16x128xf32>
    %47 = arith.addf %46, %19 : vector<16x128xf32>
    %48 = arith.mulf %36, %47 : vector<16x128xf32>
    %49 = arith.addf %45, %48 : vector<16x128xf32>
    %50 = math.tanh %49 : vector<16x128xf32>
    %cst_21 = arith.constant 1.000000e+00 : f32
    %51 = vector.broadcast %cst_21 : f32 to vector<16x128xf32>
    %52 = arith.subf %51, %43 : vector<16x128xf32>
    %53 = arith.mulf %52, %50 : vector<16x128xf32>
    %54 = arith.mulf %43, %1 : vector<16x128xf32>
    %55 = arith.addf %53, %54 : vector<16x128xf32>
    %56 = arith.truncf %55 : vector<16x128xf32> to vector<16x128xbf16>
    %c1 = arith.constant 1 : index
    %c0_22 = arith.constant 0 : index
    %c0_23 = arith.constant 0 : index
    %57 = vector.load %arg4[%c1, %c0_22, %c0_23] : memref<4x128x128xbf16, #tpu.memory_space<vmem>>, vector<1x128x128xbf16>
    %58 = vector.shape_cast %57 : vector<1x128x128xbf16> to vector<128x128xbf16>
    %cst_24 = arith.constant dense<0.000000e+00> : vector<16x128xf32>
    %59 = tpu.matmul %56, %58, %cst_24 {dimension_numbers = #tpu.dot_dimension_numbers<[1], [0], [0], [1], [0, 0, 1, 1], [], []>} : vector<16x128xbf16>, vector<128x128xbf16>, vector<16x128xf32> -> vector<16x128xf32>
    %60 = arith.truncf %59 : vector<16x128xf32> to vector<16x128xbf16>
    %cst_25 = arith.constant dense<0.000000e+00> : vector<16x128xf32>
    %61 = tpu.matmul %3, %60, %cst_25 {dimension_numbers = #tpu.dot_dimension_numbers<[1], [0], [0], [1], [0, 0, 1, 1], [], []>} : vector<16x16xbf16>, vector<16x128xbf16>, vector<16x128xf32> -> vector<16x128xf32>
    %62 = arith.truncf %61 : vector<16x128xf32> to vector<16x128xbf16>
    %63 = tpu.concatenate %62, %56 in 1 : vector<16x128xbf16>, vector<16x128xbf16> -> vector<16x256xbf16>
    %cst_26 = arith.constant dense<0.000000e+00> : vector<16x512xf32>
    %64 = tpu.matmul %63, %6, %cst_26 {dimension_numbers = #tpu.dot_dimension_numbers<[1], [0], [0], [1], [0, 0, 1, 1], [], []>} : vector<16x256xbf16>, vector<256x512xbf16>, vector<16x512xf32> -> vector<16x512xf32>
    %65 = vector.extract_strided_slice %64 {offsets = [0, 0], sizes = [16, 128], strides = [1, 1]} : vector<16x512xf32> to vector<16x128xf32>
    %66 = arith.addf %65, %10 : vector<16x128xf32>
    %67 = arith.negf %66 : vector<16x128xf32>
    %68 = math.exp %67 : vector<16x128xf32>
    %cst_27 = arith.constant 1.000000e+00 : f32
    %69 = vector.broadcast %cst_27 : f32 to vector<16x128xf32>
    %70 = arith.addf %69, %68 : vector<16x128xf32>
    %71 = arith.divf %69, %70 : vector<16x128xf32>
    %72 = vector.extract_strided_slice %64 {offsets = [0, 128], sizes = [16, 128], strides = [1, 1]} : vector<16x512xf32> to vector<16x128xf32>
    %73 = arith.addf %72, %13 : vector<16x128xf32>
    %74 = arith.negf %73 : vector<16x128xf32>
    %75 = math.exp %74 : vector<16x128xf32>
    %cst_28 = arith.constant 1.000000e+00 : f32
    %76 = vector.broadcast %cst_28 : f32 to vector<16x128xf32>
    %77 = arith.addf %76, %75 : vector<16x128xf32>
    %78 = arith.divf %76, %77 : vector<16x128xf32>
    %79 = vector.extract_strided_slice %64 {offsets = [0, 256], sizes = [16, 128], strides = [1, 1]} : vector<16x512xf32> to vector<16x128xf32>
    %80 = arith.addf %79, %16 : vector<16x128xf32>
    %81 = vector.extract_strided_slice %64 {offsets = [0, 384], sizes = [16, 128], strides = [1, 1]} : vector<16x512xf32> to vector<16x128xf32>
    %82 = arith.addf %81, %19 : vector<16x128xf32>
    %83 = arith.mulf %71, %82 : vector<16x128xf32>
    %84 = arith.addf %80, %83 : vector<16x128xf32>
    %85 = math.tanh %84 : vector<16x128xf32>
    %cst_29 = arith.constant 1.000000e+00 : f32
    %86 = vector.broadcast %cst_29 : f32 to vector<16x128xf32>
    %87 = arith.subf %86, %78 : vector<16x128xf32>
    %88 = arith.mulf %87, %85 : vector<16x128xf32>
    %89 = arith.mulf %78, %55 : vector<16x128xf32>
    %90 = arith.addf %88, %89 : vector<16x128xf32>
    %91 = arith.truncf %90 : vector<16x128xf32> to vector<16x128xbf16>
    %c2 = arith.constant 2 : index
    %c0_30 = arith.constant 0 : index
    %c0_31 = arith.constant 0 : index
    %92 = vector.load %arg4[%c2, %c0_30, %c0_31] : memref<4x128x128xbf16, #tpu.memory_space<vmem>>, vector<1x128x128xbf16>
    %93 = vector.shape_cast %92 : vector<1x128x128xbf16> to vector<128x128xbf16>
    %cst_32 = arith.constant dense<0.000000e+00> : vector<16x128xf32>
    %94 = tpu.matmul %91, %93, %cst_32 {dimension_numbers = #tpu.dot_dimension_numbers<[1], [0], [0], [1], [0, 0, 1, 1], [], []>} : vector<16x128xbf16>, vector<128x128xbf16>, vector<16x128xf32> -> vector<16x128xf32>
    %95 = arith.truncf %94 : vector<16x128xf32> to vector<16x128xbf16>
    %cst_33 = arith.constant dense<0.000000e+00> : vector<16x128xf32>
    %96 = tpu.matmul %3, %95, %cst_33 {dimension_numbers = #tpu.dot_dimension_numbers<[1], [0], [0], [1], [0, 0, 1, 1], [], []>} : vector<16x16xbf16>, vector<16x128xbf16>, vector<16x128xf32> -> vector<16x128xf32>
    %97 = arith.truncf %96 : vector<16x128xf32> to vector<16x128xbf16>
    %98 = tpu.concatenate %97, %91 in 1 : vector<16x128xbf16>, vector<16x128xbf16> -> vector<16x256xbf16>
    %cst_34 = arith.constant dense<0.000000e+00> : vector<16x512xf32>
    %99 = tpu.matmul %98, %6, %cst_34 {dimension_numbers = #tpu.dot_dimension_numbers<[1], [0], [0], [1], [0, 0, 1, 1], [], []>} : vector<16x256xbf16>, vector<256x512xbf16>, vector<16x512xf32> -> vector<16x512xf32>
    %100 = vector.extract_strided_slice %99 {offsets = [0, 0], sizes = [16, 128], strides = [1, 1]} : vector<16x512xf32> to vector<16x128xf32>
    %101 = arith.addf %100, %10 : vector<16x128xf32>
    %102 = arith.negf %101 : vector<16x128xf32>
    %103 = math.exp %102 : vector<16x128xf32>
    %cst_35 = arith.constant 1.000000e+00 : f32
    %104 = vector.broadcast %cst_35 : f32 to vector<16x128xf32>
    %105 = arith.addf %104, %103 : vector<16x128xf32>
    %106 = arith.divf %104, %105 : vector<16x128xf32>
    %107 = vector.extract_strided_slice %99 {offsets = [0, 128], sizes = [16, 128], strides = [1, 1]} : vector<16x512xf32> to vector<16x128xf32>
    %108 = arith.addf %107, %13 : vector<16x128xf32>
    %109 = arith.negf %108 : vector<16x128xf32>
    %110 = math.exp %109 : vector<16x128xf32>
    %cst_36 = arith.constant 1.000000e+00 : f32
    %111 = vector.broadcast %cst_36 : f32 to vector<16x128xf32>
    %112 = arith.addf %111, %110 : vector<16x128xf32>
    %113 = arith.divf %111, %112 : vector<16x128xf32>
    %114 = vector.extract_strided_slice %99 {offsets = [0, 256], sizes = [16, 128], strides = [1, 1]} : vector<16x512xf32> to vector<16x128xf32>
    %115 = arith.addf %114, %16 : vector<16x128xf32>
    %116 = vector.extract_strided_slice %99 {offsets = [0, 384], sizes = [16, 128], strides = [1, 1]} : vector<16x512xf32> to vector<16x128xf32>
    %117 = arith.addf %116, %19 : vector<16x128xf32>
    %118 = arith.mulf %106, %117 : vector<16x128xf32>
    %119 = arith.addf %115, %118 : vector<16x128xf32>
    %120 = math.tanh %119 : vector<16x128xf32>
    %cst_37 = arith.constant 1.000000e+00 : f32
    %121 = vector.broadcast %cst_37 : f32 to vector<16x128xf32>
    %122 = arith.subf %121, %113 : vector<16x128xf32>
    %123 = arith.mulf %122, %120 : vector<16x128xf32>
    %124 = arith.mulf %113, %90 : vector<16x128xf32>
    %125 = arith.addf %123, %124 : vector<16x128xf32>
    %126 = arith.truncf %125 : vector<16x128xf32> to vector<16x128xbf16>
    %c3 = arith.constant 3 : index
    %c0_38 = arith.constant 0 : index
    %c0_39 = arith.constant 0 : index
    %127 = vector.load %arg4[%c3, %c0_38, %c0_39] : memref<4x128x128xbf16, #tpu.memory_space<vmem>>, vector<1x128x128xbf16>
    %128 = vector.shape_cast %127 : vector<1x128x128xbf16> to vector<128x128xbf16>
    %cst_40 = arith.constant dense<0.000000e+00> : vector<16x128xf32>
    %129 = tpu.matmul %126, %128, %cst_40 {dimension_numbers = #tpu.dot_dimension_numbers<[1], [0], [0], [1], [0, 0, 1, 1], [], []>} : vector<16x128xbf16>, vector<128x128xbf16>, vector<16x128xf32> -> vector<16x128xf32>
    %130 = arith.truncf %129 : vector<16x128xf32> to vector<16x128xbf16>
    %cst_41 = arith.constant dense<0.000000e+00> : vector<16x128xf32>
    %131 = tpu.matmul %3, %130, %cst_41 {dimension_numbers = #tpu.dot_dimension_numbers<[1], [0], [0], [1], [0, 0, 1, 1], [], []>} : vector<16x16xbf16>, vector<16x128xbf16>, vector<16x128xf32> -> vector<16x128xf32>
    %132 = arith.truncf %131 : vector<16x128xf32> to vector<16x128xbf16>
    %133 = tpu.concatenate %132, %126 in 1 : vector<16x128xbf16>, vector<16x128xbf16> -> vector<16x256xbf16>
    %cst_42 = arith.constant dense<0.000000e+00> : vector<16x512xf32>
    %134 = tpu.matmul %133, %6, %cst_42 {dimension_numbers = #tpu.dot_dimension_numbers<[1], [0], [0], [1], [0, 0, 1, 1], [], []>} : vector<16x256xbf16>, vector<256x512xbf16>, vector<16x512xf32> -> vector<16x512xf32>
    %135 = vector.extract_strided_slice %134 {offsets = [0, 0], sizes = [16, 128], strides = [1, 1]} : vector<16x512xf32> to vector<16x128xf32>
    %136 = arith.addf %135, %10 : vector<16x128xf32>
    %137 = arith.negf %136 : vector<16x128xf32>
    %138 = math.exp %137 : vector<16x128xf32>
    %cst_43 = arith.constant 1.000000e+00 : f32
    %139 = vector.broadcast %cst_43 : f32 to vector<16x128xf32>
    %140 = arith.addf %139, %138 : vector<16x128xf32>
    %141 = arith.divf %139, %140 : vector<16x128xf32>
    %142 = vector.extract_strided_slice %134 {offsets = [0, 128], sizes = [16, 128], strides = [1, 1]} : vector<16x512xf32> to vector<16x128xf32>
    %143 = arith.addf %142, %13 : vector<16x128xf32>
    %144 = arith.negf %143 : vector<16x128xf32>
    %145 = math.exp %144 : vector<16x128xf32>
    %cst_44 = arith.constant 1.000000e+00 : f32
    %146 = vector.broadcast %cst_44 : f32 to vector<16x128xf32>
    %147 = arith.addf %146, %145 : vector<16x128xf32>
    %148 = arith.divf %146, %147 : vector<16x128xf32>
    %149 = vector.extract_strided_slice %134 {offsets = [0, 256], sizes = [16, 128], strides = [1, 1]} : vector<16x512xf32> to vector<16x128xf32>
    %150 = arith.addf %149, %16 : vector<16x128xf32>
    %151 = vector.extract_strided_slice %134 {offsets = [0, 384], sizes = [16, 128], strides = [1, 1]} : vector<16x512xf32> to vector<16x128xf32>
    %152 = arith.addf %151, %19 : vector<16x128xf32>
    %153 = arith.mulf %141, %152 : vector<16x128xf32>
    %154 = arith.addf %150, %153 : vector<16x128xf32>
    %155 = math.tanh %154 : vector<16x128xf32>
    %cst_45 = arith.constant 1.000000e+00 : f32
    %156 = vector.broadcast %cst_45 : f32 to vector<16x128xf32>
    %157 = arith.subf %156, %148 : vector<16x128xf32>
    %158 = arith.mulf %157, %155 : vector<16x128xf32>
    %159 = arith.mulf %148, %125 : vector<16x128xf32>
    %160 = arith.addf %158, %159 : vector<16x128xf32>
    %161 = vector.broadcast %20 : vector<1x128xf32> to vector<16x128xf32>
    %162 = arith.mulf %160, %161 : vector<16x128xf32>
    %cst_46 = arith.constant dense<0.000000e+00> : vector<16xf32>
    %163 = vector.multi_reduction <add>, %162, %cst_46 [1] : vector<16x128xf32> to vector<16xf32>
    %164 = vector.shape_cast %163 : vector<16xf32> to vector<16x1xf32>
    %c0_47 = arith.constant 0 : index
    %165 = memref.load %arg8[%c0_47] : memref<1xf32, #tpu.memory_space<smem>>
    %166 = vector.broadcast %165 : f32 to vector<16x1xf32>
    %167 = arith.addf %164, %166 : vector<16x1xf32>
    %168 = arith.negf %167 : vector<16x1xf32>
    %169 = math.exp %168 : vector<16x1xf32>
    %cst_48 = arith.constant 1.000000e+00 : f32
    %170 = vector.broadcast %cst_48 : f32 to vector<16x1xf32>
    %171 = arith.addf %170, %169 : vector<16x1xf32>
    %172 = arith.divf %170, %171 : vector<16x1xf32>
    %cst_49 = arith.constant 0.000000e+00 : f32
    %173 = vector.broadcast %cst_49 : f32 to vector<16x1xf32>
    %174 = arith.cmpf ogt, %5, %173 : vector<16x1xf32>
    %cst_50 = arith.constant -1.000000e+30 : f32
    %175 = vector.broadcast %cst_50 : f32 to vector<16x1xf32>
    %176 = arith.select %174, %172, %175 : vector<16x1xi1>, vector<16x1xf32>
    %cst_51 = arith.constant dense<0xFF800000> : vector<1xf32>
    %177 = vector.multi_reduction <maximumf>, %176, %cst_51 [0] : vector<16x1xf32> to vector<1xf32>
    %178 = vector.shape_cast %177 : vector<1xf32> to vector<1x1xf32>
    %179 = vector.broadcast %178 : vector<1x1xf32> to vector<16x1xf32>
    %180 = arith.subf %176, %179 : vector<16x1xf32>
    %181 = math.exp %180 : vector<16x1xf32>
    %182 = arith.mulf %181, %5 : vector<16x1xf32>
    %cst_52 = arith.constant dense<0.000000e+00> : vector<1xf32>
    %183 = vector.multi_reduction <add>, %182, %cst_52 [0] : vector<16x1xf32> to vector<1xf32>
    %184 = vector.shape_cast %183 : vector<1xf32> to vector<1x1xf32>
    %185 = tpu.reciprocal %184 {approx = true} : vector<1x1xf32> -> vector<1x1xf32>
    %186 = vector.broadcast %185 : vector<1x1xf32> to vector<16x1xf32>
    %187 = arith.mulf %182, %186 : vector<16x1xf32>
    %188 = vector.broadcast %187 : vector<16x1xf32> to vector<16x128xf32>
    %189 = arith.mulf %188, %160 : vector<16x128xf32>
    %cst_53 = arith.constant dense<0.000000e+00> : vector<128xf32>
    %190 = vector.multi_reduction <add>, %189, %cst_53 [0] : vector<16x128xf32> to vector<128xf32>
    %191 = vector.shape_cast %190 : vector<128xf32> to vector<1x128xf32>
    %c0_54 = arith.constant 0 : index
    %c0_55 = arith.constant 0 : index
    %c0_56 = arith.constant 0 : index
    %192 = vector.load %arg9[%c0_54, %c0_55, %c0_56] : memref<1x1x128xf32, #tpu.memory_space<vmem>>, vector<1x1x128xf32>
    %193 = vector.shape_cast %192 : vector<1x1x128xf32> to vector<1x128xf32>
    %194 = vector.shape_cast %191 : vector<1x128xf32> to vector<1x1x128xf32>
    tpu.vector_store %arg9[%c0_54, %c0_55, %c0_56], %194 {strides = array<i32>} : memref<1x1x128xf32, #tpu.memory_space<vmem>>, vector<1x1x128xf32>,
    return
  }
  func.func @transform_0(%arg0: i32) -> (i32, i32, i32) {
    %c0_i32 = arith.constant 0 : i32
    %c0_i32_0 = arith.constant 0 : i32
    %c0_i32_1 = arith.constant 0 : i32
    return %arg0, %c0_i32, %c0_i32_0 : i32, i32, i32
  }
  func.func @transform_1(%arg0: i32) -> (i32, i32, i32) {
    %c0_i32 = arith.constant 0 : i32
    %c0_i32_0 = arith.constant 0 : i32
    %c0_i32_1 = arith.constant 0 : i32
    return %arg0, %c0_i32, %c0_i32_0 : i32, i32, i32
  }
  func.func @transform_2(%arg0: i32) -> (i32, i32, i32) {
    %c0_i32 = arith.constant 0 : i32
    %c0_i32_0 = arith.constant 0 : i32
    %c0_i32_1 = arith.constant 0 : i32
    return %arg0, %c0_i32, %c0_i32_0 : i32, i32, i32
  }
  func.func @transform_3(%arg0: i32) -> (i32, i32, i32) {
    %c0_i32 = arith.constant 0 : i32
    %c0_i32_0 = arith.constant 0 : i32
    %c0_i32_1 = arith.constant 0 : i32
    %c0_i32_2 = arith.constant 0 : i32
    return %c0_i32, %c0_i32_0, %c0_i32_1 : i32, i32, i32
  }
  func.func @transform_4(%arg0: i32) -> (i32, i32) {
    %c0_i32 = arith.constant 0 : i32
    %c0_i32_0 = arith.constant 0 : i32
    %c0_i32_1 = arith.constant 0 : i32
    return %c0_i32, %c0_i32_0 : i32, i32
  }
  func.func @transform_5(%arg0: i32) -> (i32, i32) {
    %c0_i32 = arith.constant 0 : i32
    %c0_i32_0 = arith.constant 0 : i32
    %c0_i32_1 = arith.constant 0 : i32
    return %c0_i32, %c0_i32_0 : i32, i32
  }
  func.func @transform_6(%arg0: i32) -> (i32, i32) {
    %c0_i32 = arith.constant 0 : i32
    %c0_i32_0 = arith.constant 0 : i32
    %c0_i32_1 = arith.constant 0 : i32
    return %c0_i32, %c0_i32_0 : i32, i32
  }
  func.func @transform_7(%arg0: i32) -> i32 {
    %c0_i32 = arith.constant 0 : i32
    %c0_i32_0 = arith.constant 0 : i32
    return %c0_i32 : i32
  }
  func.func @transform_8(%arg0: i32) -> (i32, i32, i32) {
    %c0_i32 = arith.constant 0 : i32
    %c0_i32_0 = arith.constant 0 : i32
    %c0_i32_1 = arith.constant 0 : i32
    return %arg0, %c0_i32, %c0_i32_0 : i32, i32, i32
  }
}

</mosaic_0001>

<bundles_post_ra>
// kernel: tpu_custom_call.1
= control target key start
LH: loop header
LB: loop body
LE: loop exit
PB: predicated region body
PF: predicated region fallthrough
CT: control target
= control target key end

     0   :  { %s3743_s0 = inlined_call_operand.vmem [shape: f32[4,16,128], index: 0, kind: input, shape index: {}]   ;;  %s3744_s1 = inlined_call_operand.hbm [shape: bf16[4,16,16], index: 1, kind: input, shape index: {}]   ;;  %s3745_s2 = inlined_call_operand.vmem [shape: f32[4,16,1], index: 2, kind: input, shape index: {}]   ;;  %s3746_s3 = inlined_call_operand.hbm [shape: bf16[4,128,128], index: 3, kind: input, shape index: {}]   ;;  %s3747_s4 = inlined_call_operand.hbm [shape: bf16[256,512], index: 4, kind: input, shape index: {}]   ;;  %s3748_s5 = inlined_call_operand.vmem [shape: f32[4,128], index: 5, kind: input, shape index: {}]   ;;  %s3749_s6 = inlined_call_operand.vmem [shape: f32[1,128], index: 6, kind: input, shape index: {}]   ;;  %s3750_s7 = inlined_call_operand.<no memory space> [shape: f32[1], index: 7, kind: input, shape index: {}]   ;;  %s3751_s8 = inlined_call_operand.hbm [shape: f32[4,1,128], index: 8, kind: output, shape index: {}]  }
   0x1   :  { %13 = sst [smem:[#allocation2]] %s3750_s7 }
   0x2   :  { %14 = vsyncpa [#allocation4], 0 }
   0x3   :  { %16 = vsyncpa [#allocation4 + $0x1], 0 }
   0x4   :  { %17 = vsyncpa [#allocation7], 0 }
   0x5   :  { %18 = vsyncpa [#allocation5], 0 }
   0x6   :  { %20 = vsyncpa [#allocation5 + $0x1], 0  ;;  %s3010_s29 = smov 0   ;;  %s3012_s30 = smov 0  }
   0x7   :  { %s3014_s9 = smov 0   ;;  %s3016_s10 = smov 0  }
   0x8 LB: > { %s3031_s7 = sadd.s32 4294967295, %s2949_s10   ;;  %s2142_s11 = sadd.s32 4294967294, %s2949_s10   ;;  %s2949_s10 = sphi %s3016_s10, %s3972_s10   ;;  %s2945_s9 = sphi %s3014_s9, %s3971_s9   ;;  %s2941_s30 = sphi %s3012_s30, %s3970_s30   ;;  %s2937_s29 = sphi %s3010_s29, %s3969_s29  }
   0x9   : > { %p72_p0 = scmp.ne.s32.totalorder %s2941_s30, %s2937_s29  ;;  %p3752_p1 = scmp.eq.s32.totalorder %s3031_s7, 0 }
   0xa   : > { %p233_p3 = scmp.eq.s32.totalorder %s2142_s11, 3  ;;  %p2143_p5 = scmp.ge.s32.totalorder %s2949_s10, 1 }
   0xb   : > { %p3040_p4 = por %p3752_p1, %p72_p0  ;;  %p240_p7 = scmp.lt.s32.totalorder %s2949_s10, 5 }
   0xc   : > { %p3045_p6 = por %p233_p3, %p72_p0  ;;  %s2951_s15 = smov [#allocation6]  }
   0xd   : > { %s3844_s12 = scalar_select %p3040_p4, 1, 0 }
   0xe   : > { %s3845_s13 = scalar_select %p3045_p6, 1, 0 }
   0xf   : > { %p3050_p8 = pnand %p2143_p5, %p240_p7  ;;  %s252_s16 = sshll.u32 %s2951_s15, 4  ;;  %s253_s16 = int_to_ptr.vmem [resolvable:$true] %s252_s16 }
  0x10   : > { %s2952_s18 = smov [#allocation8]   ;;  %s2793_s22 = scalar_lea.hbm %s3746_s3, 4096 }
  0x11   : > { %s3846_s14 = scalar_select %p3050_p8, 1, 0 }
  0x12   : > { %p2444_p9 = pneg %p3050_p8  ;;  %s265_s19 = sshll.u32 %s2952_s18, 4  ;;  %s3062_s19 = int_to_ptr.vmem [resolvable:$true] %s265_s19 }
  0x13   : > { %p2794_p11 = scmp.ne.s32.totalorder %s3746_s3, %s2793_s22  ;;  %p2800_p3 = scmp.lt.u32.totalorder %s2793_s22, %s3746_s3 }
  0x14   : > { %p3058_p10 = pnand %p2444_p9, %p3752_p1 }
  0x16   : > { %p2795_p12 = pneg %p3058_p10 }
  0x18   : > { %p2796_p13 = pnand %p2795_p12, %p2794_p11 }
  0x1a   : > { %p2797_p0 = pneg %p2796_p13 }
  0x1c   : > { %p2802_p5 = pnand %p2800_p3, %p2797_p0 }
  0x1e   : > { %2805 = shalt.err (!%p2802_p5)
}
  0x1f   : > { %s2806_s27 = scalar_lea.vmem %s253_s16, 4096  ;;  %p2814_p2 = scmp.lt.s32.totalorder %s253_s16, %s253_s16 }
  0x20   : > { %p2807_p7 = scmp.ne.s32.totalorder %s253_s16, %s2806_s27  ;;  %p2815_p6 = scmp.lt.s32.totalorder %s2806_s27, %s2806_s27 }
  0x22   : > { %p2809_p9 = pnand %p2807_p7, %p2795_p12  ;;  %p2816_p4 = por %p2815_p6, %p2814_p2 }
  0x24   : > { %p2810_p1 = pneg %p2809_p9 }
  0x26   : > { %p2817_p8 = pnand %p2816_p4, %p2810_p1 }
  0x28   : > { %2820 = shalt.err (!%p2817_p8)
}
  0x29   : > { %s3755_s28 = smov 64   ;;  %s2954_s11 = smov 4  }
  0x2a   : > { %2447 = dma.hbm_to_vmem [thread:$0]  (!%p3058_p10), %s3746_s3, 4096, %s253_s16, [#allocation7], %s3755_s28, %s3755_s28, %s2954_s11  }
  0x2b   : > { %s2821_s22 = scalar_lea.hbm %s3747_s4, 8192 }
  0x2c   : > { %p2822_p1 = scmp.ne.s32.totalorder %s3747_s4, %s2821_s22  ;;  %p2828_p6 = scmp.lt.u32.totalorder %s2821_s22, %s3747_s4 }
  0x2e   : > { %p2824_p2 = pnand %p2822_p1, %p2795_p12 }
  0x30   : > { %p2825_p4 = pneg %p2824_p2 }
  0x32   : > { %p2830_p8 = pnand %p2828_p6, %p2825_p4 }
  0x34   : > { %2833 = shalt.err (!%p2830_p8)
}
  0x35   : > { %s2834_s16 = scalar_lea.vmem %s3062_s19, 8192  ;;  %p2842_p3 = scmp.lt.s32.totalorder %s3062_s19, %s3062_s19 }
  0x36   : > { %p2835_p11 = scmp.ne.s32.totalorder %s3062_s19, %s2834_s16  ;;  %p2843_p5 = scmp.lt.s32.totalorder %s2834_s16, %s2834_s16 }
  0x38   : > { %p2837_p13 = pnand %p2835_p11, %p2795_p12  ;;  %p2844_p7 = por %p2843_p5, %p2842_p3 }
  0x3a   : > { %p2838_p0 = pneg %p2837_p13 }
  0x3c   : > { %p2845_p9 = pnand %p2844_p7, %p2838_p0 }
  0x3e   : > { %2848 = shalt.err (!%p2845_p9)
}
  0x3f   : > { %s2955_s27 = smov 256   ;;  %s2956_s15 = smov 16  }
  0x40   : > { %2450 = dma.hbm_to_vmem [thread:$0]  (!%p3058_p10), %s3747_s4, 8192, %s3062_s19, [#allocation7], %s2955_s27, %s2955_s27, %s2956_s15  }
  0x41   : > { %s3115_s21 = sadd.s32 1, %s2949_s10   ;;  %s59_s23 = sadd.s32 1, %s2945_s9 }
  0x42   : > { %s56_s22 = ssub.s32 %s2949_s10, %s3115_s21  ;;  %p66_p1 = scmp.ne.s32.totalorder %s2945_s9, %s2941_s30 }
  0x43   : > { %p57_p12 = scmp.eq.s32.totalorder %s56_s22, 0  ;;  %p67_p2 = scmp.eq.s32.totalorder %s2949_s10, 0 }
  0x44   : > { %p3848_p6 = scmp.eq.s32.totalorder %s3031_s7, 3  ;;  %p2461_p11 = scmp.lt.s32.totalorder %s2949_s10, 4 }
  0x45   : > { %s3124_s24 = scalar_select %p57_p12, %s2945_s9, %s59_s23  }
  0x46   : > { %p68_p4 = por %p67_p2, %p66_p1  ;;  %p3128_p8 = por %p3848_p6, %p66_p1 }
  0x47   : > { %s296_s17 = sand.u32 1, %s2945_s9   ;;  %s2281_s19 = sshll.u32 %s2949_s10, 7 }
  0x48   : > { %s2147_s26 = sshll.u32 %s296_s17, 3  ;;  %s3138_s15 = scalar_lea.hbm %s3744_s1, %s2281_s19 }
  0x49   : > { %s300_s18 = scalar_lea.vmem [#allocation3], %s2147_s26  ;;  %p3142_p10 = pnand %p2461_p11, %p68_p4 }
  0x4a   : > { %s307_s20 = sshll.u32 %s300_s18, 4  ;;  %s3146_s23 = scalar_lea.sflag [#allocation4], %s296_s17  ;;  %s3140_s20 = int_to_ptr.vmem [resolvable:$true] %s307_s20 }
  0x4b   : > { %s2849_s28 = scalar_lea.hbm %s3138_s15, 128  ;;  %p2851_p0 = pneg %p3142_p10 }
  0x4c   : > { %p2850_p13 = scmp.ne.s32.totalorder %s3138_s15, %s2849_s28  ;;  %s2854_s16 = scalar_lea.hbm %s3744_s1, 512 }
  0x4d   : > { %p2855_p7 = scmp.lt.u32.totalorder %s3138_s15, %s3744_s1  ;;  %p2856_p9 = scmp.lt.u32.totalorder %s2854_s16, %s2849_s28 }
  0x4e   : > { %p2852_p3 = pnand %p2851_p0, %p2850_p13  ;;  %p2858_p1 = scmp.lt.u32.totalorder %s2849_s28, %s3138_s15 }
  0x4f   : > { %p2857_p12 = por %p2856_p9, %p2855_p7 }
  0x50   : > { %p2853_p5 = pneg %p2852_p3 }
  0x51   : > { %p2859_p2 = por %p2858_p1, %p2857_p12 }
  0x53   : > { %p2860_p4 = pnand %p2859_p2, %p2853_p5 }
  0x55   : > { %2863 = shalt.err (!%p2860_p4)
}
  0x56   : > { %s2864_s17 = scalar_lea.vmem %s3140_s20, 128  ;;  %s2957_s26 = smov [#allocation3]  }
  0x57   : > { %p2865_p6 = scmp.ne.s32.totalorder %s3140_s20, %s2864_s17  ;;  %s2869_s19 = sshll.u32 %s2957_s26, 4  ;;  %s2870_s19 = int_to_ptr.vmem [resolvable:$false] %s2869_s19 }
  0x58   : > { %s2871_s27 = scalar_lea.vmem %s2870_s19, 256  ;;  %p2872_p3 = scmp.lt.s32.totalorder %s3140_s20, %s2870_s19 }
  0x59   : > { %p2867_p11 = pnand %p2865_p6, %p2851_p0  ;;  %p2873_p7 = scmp.lt.s32.totalorder %s2871_s27, %s2864_s17 }
  0x5b   : > { %p2868_p13 = pneg %p2867_p11  ;;  %p2874_p9 = por %p2873_p7, %p2872_p3 }
  0x5d   : > { %p2875_p12 = pnand %p2874_p9, %p2868_p13 }
  0x5f   : > { %2878 = shalt.err (!%p2875_p12)
}
  0x60   : > { %s3851_s28 = smov 64   ;;  %p3852_p0 = scmp.ne.s32.totalorder %s3846_s14, 0 }
  0x61   : > { %2454 = dma.hbm_to_vmem [thread:$0]  (!%p3142_p10), %s3138_s15, 128, %s3140_s20, %s3146_s23, %s3851_s28, %s3851_s28, %s2954_s11  }
  0x62   : > { %327 = sbr.rel (%p3852_p0) target bundleno = 3334 (0xd06), region = 52 }
  0x69   : > { %s3180_s16 = sand.u32 1, %s2941_s30   ;;  %p3853_p5 = scmp.ne.s32.totalorder %s3844_s12, 0 }
  0x6a   : > { %s2151_s18 = sshll.u32 %s3180_s16, 3  ;;  %s330_s17 = scalar_lea.sflag [#allocation4], %s3180_s16 }
  0x6b   : > { %s3184_s26 = scalar_lea.vmem [#allocation3], %s2151_s18 }
  0x6c   : > { %2924 = dma.done.wait (%p3853_p5), %s330_s17, 128  }
  0x6d   : > { %2926 = vsyncadd (%p3853_p5), %s330_s17, 4294967168  ;;  %p3854_p10 = scmp.eq.s32.totalorder %s3031_s7, 0 }
  0x6f   : > { %2928 = dma.done.wait (%p3854_p10), [#allocation7], 12288   ;;  %p3855_p1 = pmov %p3854_p10 }
  0x70   : > { %v3756_v0 = vmov 0.0   ;;  %vm2959_vm0 = vmmov 0   ;;  %v2508_v1 = vld [vmem:[#allocation6] sm:$0xff]   ;;  %v2509_v2 = vld [vmem:[#allocation6 + $0x8] sm:$0xff]   ;;  %v2510_v3 = vld [vmem:[#allocation6 + $0x10] sm:$0xff]   ;;  %p383_p2 = scmp.lt.s32.totalorder %s3031_s7, 3 }
  0x71   : > { %2930 = vsyncadd (%p3855_p1), [#allocation7], 4294955008  ;;  %2328 = vmatprep.subr.bf16.mxu0 %v3756_v0  ;;  %2344 = vmatprep.mubr.msk.bf16.mxu0 %vm2959_vm0, %v3756_v0  ;;  %v2511_v4 = vld [vmem:[#allocation6 + $0x18] sm:$0xff]   ;;  %v2512_v5 = vld [vmem:[#allocation6 + $0x20] sm:$0xff]   ;;  %vm594_vm1 = vcmask 130048   ;;  %s1950_s28 = sld [smem:[#allocation2]] }
  0x72   : > { %2348 = vmatprep.subr.bf16.mxu1 %v3756_v0  ;;  %2350 = vmatprep.mubr.msk.bf16.mxu1 %vm2959_vm0, %v3756_v0  ;;  %s3205_s12 = scalar_select %p383_p2, %s3031_s7, 3  ;;  %v2513_v6 = vld [vmem:[#allocation6 + $0x28] sm:$0xff]   ;;  %v2514_v7 = vld [vmem:[#allocation6 + $0x30] sm:$0xff]   ;;  %v2515_v8 = vld [vmem:[#allocation6 + $0x38] sm:$0xff]   ;;  %vm1970_vm4 = vcmask 7168  }
  0x73   : > { %2329 = vmatpush3.bf16.msra.mxu0 %v2508_v1  ;;  %v3227_v12 = vld [vmem:[#allocation8 + $0xc] ss:$16 sps:$4 sm:$0xff]   ;;  %v3229_v13 = vld [vmem:[#allocation8 + $0x8] ss:$16 sps:$4 sm:$0xff]   ;;  %v3317_v45 = vld [vmem:[#allocation8 + $0x4] ss:$16 sps:$4 sm:$0xff]  }
  0x74   : > { %2330 = vmatprep.subr.bf16.mxu0 %v3756_v0  ;;  %s2282_s14 = sshll.u32 %s3205_s12, 4  ;;  %v3232_v14 = vld [vmem:[#allocation8 + $0x2c] ss:$16 sps:$4 sm:$0xff]   ;;  %v3236_v15 = vld [vmem:[#allocation8 + $0x28] ss:$16 sps:$4 sm:$0xff]   ;;  %3881 = vst [vmem:[#allocation38_spill] sm:$0xff] %v3317_v45 }
  0x75   : > { %s387_s20 = scalar_lea.vmem %s3743_s0, %s2282_s14  ;;  %v3238_v16 = vld [vmem:[#allocation8 + $0x4c] ss:$16 sps:$4 sm:$0xff]   ;;  %v3242_v17 = vld [vmem:[#allocation8 + $0x48] ss:$16 sps:$4 sm:$0xff]   ;;  %v3322_v49 = vld [vmem:[#allocation8] ss:$16 sps:$4 sm:$0xff]  }
  0x76   : > { %v3216_v9 = vld [vmem:[%s387_s20] sm:$0xff]  ;;  %v3218_v10 = vld [vmem:[%s387_s20 + $0x8] sm:$0xff]  ;;  %3856 = vst [vmem:[#allocation13_spill] sm:$0xff] %v3242_v17  ;;  %s2278_s12 = sshll.u32 %s3031_s7, 4  ;;  %s2021_s23 = scalar_lea.sflag [#allocation5], %s3180_s16 }
  0x77   : > { %2331 = vmatpush3.bf16.msra.mxu0 %v2509_v2  ;;  %v3223_v11 = vpack.c.bf16 %v3218_v10, %v3216_v9  ;;  %v3244_v18 = vld [vmem:[#allocation8 + $0x6c] ss:$16 sps:$4 sm:$0xff]   ;;  %v3248_v19 = vld [vmem:[#allocation8 + $0x68] ss:$16 sps:$4 sm:$0xff]   ;;  %v3325_v50 = vld [vmem:[#allocation8 + $0x24] ss:$16 sps:$4 sm:$0xff]   ;;  %s3700_s22 = scalar_lea.hbm %s3751_s8, %s2278_s12 }
  0x78   : > { %2332 = vmatprep.subr.bf16.mxu0 %v3756_v0  ;;  %3857 = vst [vmem:[#allocation14_spill] sm:$0xff] %v3244_v18  ;;  %3858 = vst [vmem:[#allocation15_spill] sm:$0xff] %v3248_v19  ;;  %v3250_v20 = vld [vmem:[#allocation8 + $0x8c] ss:$16 sps:$4 sm:$0xff]   ;;  %v3254_v21 = vld [vmem:[#allocation8 + $0x88] ss:$16 sps:$4 sm:$0xff]  }
  0x79   : > { %3859 = vst [vmem:[#allocation16_spill] sm:$0xff] %v3250_v20  ;;  %3860 = vst [vmem:[#allocation17_spill] sm:$0xff] %v3254_v21  ;;  %v3256_v22 = vld [vmem:[#allocation8 + $0xac] ss:$16 sps:$4 sm:$0xff]   ;;  %v3260_v23 = vld [vmem:[#allocation8 + $0xa8] ss:$16 sps:$4 sm:$0xff]  }
  0x7a   : > { %3861 = vst [vmem:[#allocation18_spill] sm:$0xff] %v3256_v22  ;;  %3862 = vst [vmem:[#allocation19_spill] sm:$0xff] %v3260_v23  ;;  %v3262_v24 = vld [vmem:[#allocation8 + $0xcc] ss:$16 sps:$4 sm:$0xff]   ;;  %v3266_v25 = vld [vmem:[#allocation8 + $0xc8] ss:$16 sps:$4 sm:$0xff]  }
  0x7b   : > { %2333 = vmatpush3.bf16.msra.mxu0 %v2510_v3  ;;  %3863 = vst [vmem:[#allocation20_spill] sm:$0xff] %v3262_v24  ;;  %3864 = vst [vmem:[#allocation21_spill] sm:$0xff] %v3266_v25  ;;  %v3268_v26 = vld [vmem:[#allocation8 + $0xec] ss:$16 sps:$4 sm:$0xff]   ;;  %v3272_v27 = vld [vmem:[#allocation8 + $0xe8] ss:$16 sps:$4 sm:$0xff]  }
  0x7c   : > { %2334 = vmatprep.subr.bf16.mxu0 %v3756_v0  ;;  %3865 = vst [vmem:[#allocation22_spill] sm:$0xff] %v3268_v26  ;;  %3866 = vst [vmem:[#allocation23_spill] sm:$0xff] %v3272_v27  ;;  %v3274_v28 = vld [vmem:[#allocation8 + $0x10c] ss:$16 sps:$4 sm:$0xff]   ;;  %v3278_v29 = vld [vmem:[#allocation8 + $0x108] ss:$16 sps:$4 sm:$0xff]  }
  0x7d   : > { %3867 = vst [vmem:[#allocation24_spill] sm:$0xff] %v3274_v28  ;;  %3868 = vst [vmem:[#allocation25_spill] sm:$0xff] %v3278_v29  ;;  %v3280_v30 = vld [vmem:[#allocation8 + $0x12c] ss:$16 sps:$4 sm:$0xff]   ;;  %v3284_v31 = vld [vmem:[#allocation8 + $0x128] ss:$16 sps:$4 sm:$0xff]  }
  0x7e   : > { %3869 = vst [vmem:[#allocation26_spill] sm:$0xff] %v3280_v30  ;;  %3870 = vst [vmem:[#allocation27_spill] sm:$0xff] %v3284_v31  ;;  %v3286_v32 = vld [vmem:[#allocation8 + $0x14c] ss:$16 sps:$4 sm:$0xff]   ;;  %v3290_v33 = vld [vmem:[#allocation8 + $0x148] ss:$16 sps:$4 sm:$0xff]  }
  0x7f   : > { %2335 = vmatpush3.bf16.msra.mxu0 %v2511_v4  ;;  %3871 = vst [vmem:[#allocation28_spill] sm:$0xff] %v3286_v32  ;;  %3872 = vst [vmem:[#allocation29_spill] sm:$0xff] %v3290_v33  ;;  %v3292_v34 = vld [vmem:[#allocation8 + $0x16c] ss:$16 sps:$4 sm:$0xff]   ;;  %v3296_v35 = vld [vmem:[#allocation8 + $0x168] ss:$16 sps:$4 sm:$0xff]  }
  0x80   : > { %2336 = vmatprep.subr.bf16.mxu0 %v3756_v0  ;;  %3873 = vst [vmem:[#allocation30_spill] sm:$0xff] %v3292_v34  ;;  %3874 = vst [vmem:[#allocation31_spill] sm:$0xff] %v3296_v35  ;;  %v3298_v36 = vld [vmem:[#allocation8 + $0x18c] ss:$16 sps:$4 sm:$0xff]   ;;  %v3302_v37 = vld [vmem:[#allocation8 + $0x188] ss:$16 sps:$4 sm:$0xff]  }
  0x81   : > { %3875 = vst [vmem:[#allocation32_spill] sm:$0xff] %v3298_v36  ;;  %3876 = vst [vmem:[#allocation33_spill] sm:$0xff] %v3302_v37  ;;  %v3304_v38 = vld [vmem:[#allocation8 + $0x1ac] ss:$16 sps:$4 sm:$0xff]   ;;  %v3308_v39 = vld [vmem:[#allocation8 + $0x1a8] ss:$16 sps:$4 sm:$0xff]  }
  0x82   : > { %3877 = vst [vmem:[#allocation34_spill] sm:$0xff] %v3304_v38  ;;  %3878 = vst [vmem:[#allocation35_spill] sm:$0xff] %v3308_v39  ;;  %v3310_v40 = vld [vmem:[#allocation8 + $0x1cc] ss:$16 sps:$4 sm:$0xff]   ;;  %v3314_v41 = vld [vmem:[#allocation8 + $0x1c8] ss:$16 sps:$4 sm:$0xff]  }
  0x83   : > { %2337 = vmatpush3.bf16.msra.mxu0 %v2512_v5  ;;  %3879 = vst [vmem:[#allocation36_spill] sm:$0xff] %v3310_v40  ;;  %3880 = vst [vmem:[#allocation37_spill] sm:$0xff] %v3314_v41  ;;  %v3320_v48 = vld [vmem:[%s3184_s26] sm:$0xff]   ;;  %s2961_s7 = smov [#allocation9]  }
  0x84   : > { %2338 = vmatprep.subr.bf16.mxu0 %v3756_v0  ;;  %v3330_v51 = vld [vmem:[#allocation8 + $0x20] ss:$16 sps:$4 sm:$0xff]   ;;  %v3334_v52 = vld [vmem:[#allocation8 + $0x44] ss:$16 sps:$4 sm:$0xff]   ;;  %s2883_s27 = sshll.u32 %s2961_s7, 4  ;;  %s2884_s27 = int_to_ptr.vmem [resolvable:$false] %s2883_s27 }
  0x85   : > { %v3337_v53 = vld [vmem:[#allocation8 + $0x40] ss:$16 sps:$4 sm:$0xff]   ;;  %v3340_v54 = vld [vmem:[#allocation8 + $0x64] ss:$16 sps:$4 sm:$0xff]  }
  0x86   : > { %v3343_v55 = vld [vmem:[#allocation8 + $0x60] ss:$16 sps:$4 sm:$0xff]   ;;  %v3346_v56 = vld [vmem:[#allocation8 + $0x84] ss:$16 sps:$4 sm:$0xff]  }
  0x87   : > { %2339 = vmatpush3.bf16.msra.mxu0 %v2513_v6  ;;  %3882 = vst [vmem:[#allocation39_spill] sm:$0xff] %v3343_v55  ;;  %3883 = vst [vmem:[#allocation40_spill] sm:$0xff] %v3346_v56  ;;  %v3349_v57 = vld [vmem:[#allocation8 + $0x80] ss:$16 sps:$4 sm:$0xff]   ;;  %v3352_v58 = vld [vmem:[#allocation8 + $0xa4] ss:$16 sps:$4 sm:$0xff]  }
  0x88   : > { %2340 = vmatprep.subr.bf16.mxu0 %v3756_v0  ;;  %3884 = vst [vmem:[#allocation41_spill] sm:$0xff] %v3349_v57  ;;  %3885 = vst [vmem:[#allocation42_spill] sm:$0xff] %v3352_v58  ;;  %v3355_v59 = vld [vmem:[#allocation8 + $0xa0] ss:$16 sps:$4 sm:$0xff]   ;;  %v3358_v60 = vld [vmem:[#allocation8 + $0xc4] ss:$16 sps:$4 sm:$0xff]  }
  0x89   : > { %3886 = vst [vmem:[#allocation43_spill] sm:$0xff] %v3355_v59  ;;  %3887 = vst [vmem:[#allocation44_spill] sm:$0xff] %v3358_v60  ;;  %v3361_v61 = vld [vmem:[#allocation8 + $0xc0] ss:$16 sps:$4 sm:$0xff]   ;;  %v3364_v62 = vld [vmem:[#allocation8 + $0xe4] ss:$16 sps:$4 sm:$0xff]  }
  0x8a   : > { %3888 = vst [vmem:[#allocation45_spill] sm:$0xff] %v3361_v61  ;;  %3889 = vst [vmem:[#allocation46_spill] sm:$0xff] %v3364_v62  ;;  %v3367_v63 = vld [vmem:[#allocation8 + $0xe0] ss:$16 sps:$4 sm:$0xff]   ;;  %v3370_v1 = vld [vmem:[#allocation8 + $0x104] ss:$16 sps:$4 sm:$0xff]  }
  0x8b   : > { %2341 = vmatpush3.bf16.msra.mxu0 %v2514_v7  ;;  %3890 = vst [vmem:[#allocation47_spill] sm:$0xff] %v3367_v63  ;;  %3891 = vst [vmem:[#allocation48_spill] sm:$0xff] %v3370_v1  ;;  %v3373_v2 = vld [vmem:[#allocation8 + $0x100] ss:$16 sps:$4 sm:$0xff]   ;;  %v3376_v3 = vld [vmem:[#allocation8 + $0x124] ss:$16 sps:$4 sm:$0xff]  }
  0x8c   : > { %2342 = vmatprep.subr.bf16.mxu0 %v3756_v0  ;;  %3892 = vst [vmem:[#allocation49_spill] sm:$0xff] %v3373_v2  ;;  %3893 = vst [vmem:[#allocation50_spill] sm:$0xff] %v3376_v3  ;;  %v3379_v4 = vld [vmem:[#allocation8 + $0x120] ss:$16 sps:$4 sm:$0xff]   ;;  %v3382_v5 = vld [vmem:[#allocation8 + $0x144] ss:$16 sps:$4 sm:$0xff]  }
  0x8d   : > { %3894 = vst [vmem:[#allocation51_spill] sm:$0xff] %v3379_v4  ;;  %3895 = vst [vmem:[#allocation52_spill] sm:$0xff] %v3382_v5  ;;  %v3385_v6 = vld [vmem:[#allocation8 + $0x140] ss:$16 sps:$4 sm:$0xff]   ;;  %v3388_v7 = vld [vmem:[#allocation8 + $0x164] ss:$16 sps:$4 sm:$0xff]  }
  0x8e   : > { %3896 = vst [vmem:[#allocation53_spill] sm:$0xff] %v3385_v6  ;;  %3897 = vst [vmem:[#allocation54_spill] sm:$0xff] %v3388_v7  ;;  %v3413_v0 = vld [vmem:[#allocation8 + $0x1e4] ss:$16 sps:$4 sm:$0xff]  }
  0x8f   : > { %2343 = vmatpush3.bf16.msra.mxu0 %v2515_v8  ;;  %v3391_v8 = vld [vmem:[#allocation8 + $0x160] ss:$16 sps:$4 sm:$0xff]   ;;  %3905 = vst [vmem:[#allocation62_spill] sm:$0xff] %v3413_v0 }
  0x90   : > { %1003 = vmatprep.subr.bf16.mxu0 %v3227_v12  ;;  %3898 = vst [vmem:[#allocation55_spill] sm:$0xff] %v3391_v8 }
  0x92   : > { %2345 = vmatmul.mubr.bf16.vlgmr.msra.gmra.mrb[0].mxu0 %v3223_v11 }
  0x93   : > { %1035 = vmatprep.mubr.bf16.mxu0 %v3223_v11  ;;  %1004 = vmatpush1.bf16.msra.mxu0 %v3229_v13 }
  0x94   : > { %1005 = vmatprep.subr.bf16.mxu0 %v3232_v14 }
  0x97   : > { %1006 = vmatpush1.bf16.msra.mxu0 %v3236_v15 }
  0x98   : > { %1007 = vmatprep.subr.bf16.mxu0 %v3238_v16 }
  0x9b   : > { %1008 = vmatpush1.bf16.msra.mxu0 %v3242_v17 }
  0x9c   : > { %1009 = vmatprep.subr.bf16.mxu0 %v3244_v18 }
  0x9f   : > { %1010 = vmatpush1.bf16.msra.mxu0 %v3248_v19 }
  0xa0   : > { %1011 = vmatprep.subr.bf16.mxu0 %v3250_v20 }
  0xa3   : > { %1012 = vmatpush1.bf16.msra.mxu0 %v3254_v21 }
  0xa4   : > { %1013 = vmatprep.subr.bf16.mxu0 %v3256_v22 }
  0xa7   : > { %1014 = vmatpush1.bf16.msra.mxu0 %v3260_v23 }
  0xa8   : > { %1015 = vmatprep.subr.bf16.mxu0 %v3262_v24 }
  0xab   : > { %1016 = vmatpush1.bf16.msra.mxu0 %v3266_v25 }
  0xac   : > { %1017 = vmatprep.subr.bf16.mxu0 %v3268_v26 }
  0xaf   : > { %1018 = vmatpush1.bf16.msra.mxu0 %v3272_v27 }
  0xb0   : > { %1019 = vmatprep.subr.bf16.mxu0 %v3274_v28 }
  0xb3   : > { %1020 = vmatpush1.bf16.msra.mxu0 %v3278_v29 }
  0xb4   : > { %1021 = vmatprep.subr.bf16.mxu0 %v3280_v30 }
  0xb7   : > { %1022 = vmatpush1.bf16.msra.mxu0 %v3284_v31 }
  0xb8   : > { %1023 = vmatprep.subr.bf16.mxu0 %v3286_v32 }
  0xbb   : > { %1024 = vmatpush1.bf16.msra.mxu0 %v3290_v33 }
  0xbc   : > { %1025 = vmatprep.subr.bf16.mxu0 %v3292_v34 }
  0xbf   : > { %1026 = vmatpush1.bf16.msra.mxu0 %v3296_v35 }
  0xc0   : > { %1027 = vmatprep.subr.bf16.mxu0 %v3298_v36 }
  0xc3   : > { %1028 = vmatpush1.bf16.msra.mxu0 %v3302_v37 }
  0xc4   : > { %1029 = vmatprep.subr.bf16.mxu0 %v3304_v38  ;;  %v3909_v38 = vmov 0.0  }
  0xc7   : > { %1030 = vmatpush1.bf16.msra.mxu0 %v3308_v39  ;;  %v3419_v39 = vld [vmem:[#allocation8 + $0x1e8] ss:$16 sps:$4 sm:$0xff]  }
  0xc8   : > { %1031 = vmatprep.subr.bf16.mxu0 %v3310_v40  ;;  %v3417_v40 = vld [vmem:[#allocation8 + $0x1e0] ss:$16 sps:$4 sm:$0xff]   ;;  %3908 = vst [vmem:[#allocation65_spill] sm:$0xff] %v3419_v39 }
  0xc9   : > { %3907 = vst [vmem:[#allocation64_spill] sm:$0xff] %v3417_v40 }
  0xcb   : > { %1032 = vmatpush1.bf16.msra.mxu0 %v3314_v41  ;;  %v3415_v41 = vld [vmem:[#allocation8 + $0x1ec] ss:$16 sps:$4 sm:$0xff]  }
  0xcc   : > { %3906 = vst [vmem:[#allocation63_spill] sm:$0xff] %v3415_v41  ;;  %1033 = vmatprep.subr.bf16.mxu0 %v3415_v41  ;;  %v2613_v41 = vld [vmem:[#allocation6 + $0x40] sm:$0xff]  }
  0xcf   : > { %1034 = vmatpush1.bf16.msra.mxu0 %v3419_v39  ;;  %v2614_v39 = vld [vmem:[#allocation6 + $0x48] sm:$0xff]  }
  0xd0   : > { %2374 = vmatprep.subr.bf16.mxu0 %v3909_v38 }
 0x165   : > { %v581_v42 = vpop.f32.mrb[0].mxu0 }
 0x166   : > { %v2346_v43 = vpop.f32.mrb[1].mxu0 }
 0x167   : > { %v584_v44 = vpop.f32.mrb[2].mxu0  ;;  %v3400_v43 = vld [vmem:[#allocation8 + $0x1a4] ss:$16 sps:$4 sm:$0xff]  }
 0x168   : > { %v588_v46 = vpack.c.bf16 %v584_v44, %v581_v42  ;;  %v2347_v47 = vpop.f32.mrb[3].mxu0  ;;  %v3397_v42 = vld [vmem:[#allocation8 + $0x180] ss:$16 sps:$4 sm:$0xff]   ;;  %3901 = vst [vmem:[#allocation58_spill] sm:$0xff] %v3400_v43 }
 0x169   : > { %3900 = vst [vmem:[#allocation57_spill] sm:$0xff] %v3397_v42  ;;  %v3403_v44 = vld [vmem:[#allocation8 + $0x1a0] ss:$16 sps:$4 sm:$0xff]  }
 0x16a   : > { %2349 = vmatpush3.bf16.msra.mxu1 %v588_v46  ;;  %3902 = vst [vmem:[#allocation59_spill] sm:$0xff] %v3403_v44  ;;  %v3406_v46 = vld [vmem:[#allocation8 + $0x1c4] ss:$16 sps:$4 sm:$0xff]   ;;  %v3409_v47 = vld [vmem:[#allocation8 + $0x1c0] ss:$16 sps:$4 sm:$0xff]  }
 0x16b   : > { %960 = vmatprep.subr.bf16.mxu1 %v3317_v45  ;;  %3903 = vst [vmem:[#allocation60_spill] sm:$0xff] %v3406_v46  ;;  %3904 = vst [vmem:[#allocation61_spill] sm:$0xff] %v3409_v47 }
 0x16d   : > { %2351 = vmatmul.mubr.msk.bf16.vlgmr.msra.gmra.mrb[0].mxu1 %vm594_vm1, %v3320_v48 }
 0x16e   : > { %961 = vmatpush1.bf16.msra.mxu1 %v3322_v49  ;;  %992 = vmatprep.mubr.bf16.mxu1 %v3223_v11  ;;  %v3394_v11 = vld [vmem:[#allocation8 + $0x184] ss:$16 sps:$4 sm:$0xff]  }
 0x16f   : > { %962 = vmatprep.subr.bf16.mxu1 %v3325_v50  ;;  %3899 = vst [vmem:[#allocation56_spill] sm:$0xff] %v3394_v11 }
 0x172   : > { %963 = vmatpush1.bf16.msra.mxu1 %v3330_v51 }
 0x173   : > { %964 = vmatprep.subr.bf16.mxu1 %v3334_v52 }
 0x176   : > { %965 = vmatpush1.bf16.msra.mxu1 %v3337_v53 }
 0x177   : > { %966 = vmatprep.subr.bf16.mxu1 %v3340_v54 }
 0x17a   : > { %967 = vmatpush1.bf16.msra.mxu1 %v3343_v55 }
 0x17b   : > { %968 = vmatprep.subr.bf16.mxu1 %v3346_v56 }
 0x17e   : > { %969 = vmatpush1.bf16.msra.mxu1 %v3349_v57 }
 0x17f   : > { %970 = vmatprep.subr.bf16.mxu1 %v3352_v58 }
 0x182   : > { %971 = vmatpush1.bf16.msra.mxu1 %v3355_v59 }
 0x183   : > { %972 = vmatprep.subr.bf16.mxu1 %v3358_v60 }
 0x186   : > { %973 = vmatpush1.bf16.msra.mxu1 %v3361_v61 }
 0x187   : > { %974 = vmatprep.subr.bf16.mxu1 %v3364_v62 }
 0x18a   : > { %975 = vmatpush1.bf16.msra.mxu1 %v3367_v63 }
 0x18b   : > { %976 = vmatprep.subr.bf16.mxu1 %v3370_v1 }
 0x18e   : > { %977 = vmatpush1.bf16.msra.mxu1 %v3373_v2 }
 0x18f   : > { %978 = vmatprep.subr.bf16.mxu1 %v3376_v3 }
 0x192   : > { %979 = vmatpush1.bf16.msra.mxu1 %v3379_v4 }
 0x193   : > { %980 = vmatprep.subr.bf16.mxu1 %v3382_v5 }
 0x196   : > { %981 = vmatpush1.bf16.msra.mxu1 %v3385_v6 }
 0x197   : > { %982 = vmatprep.subr.bf16.mxu1 %v3388_v7 }
 0x19a   : > { %983 = vmatpush1.bf16.msra.mxu1 %v3391_v8 }
 0x19b   : > { %984 = vmatprep.subr.bf16.mxu1 %v3394_v11 }
 0x19e   : > { %985 = vmatpush1.bf16.msra.mxu1 %v3397_v42 }
 0x19f   : > { %986 = vmatprep.subr.bf16.mxu1 %v3400_v43 }
 0x1a2   : > { %987 = vmatpush1.bf16.msra.mxu1 %v3403_v44 }
 0x1a3   : > { %988 = vmatprep.subr.bf16.mxu1 %v3406_v46 }
 0x1a6   : > { %989 = vmatpush1.bf16.msra.mxu1 %v3409_v47 }
 0x1a7   : > { %990 = vmatprep.subr.bf16.mxu1 %v3413_v0 }
 0x1aa   : > { %991 = vmatpush1.bf16.msra.mxu1 %v3417_v40 }
 0x1ab   : > { %2354 = vmatprep.subr.bf16.mxu1 %v3909_v38 }
 0x240   : > { %v632_v37 = vpop.f32.mrb[0].mxu1 }
 0x241   : > { %v2352_v36 = vpop.f32.mrb[1].mxu1 }
 0x242   : > { %v635_v35 = vpop.f32.mrb[2].mxu1  ;;  %v2615_v36 = vld [vmem:[#allocation6 + $0x50] sm:$0xff]  }
 0x243   : > { %v639_v34 = vpack.c.bf16 %v635_v35, %v632_v37  ;;  %v2353_v33 = vpop.f32.mrb[3].mxu1  ;;  %v2618_v35 = vld [vmem:[#allocation6 + $0x68] sm:$0xff]   ;;  %v2619_v37 = vld [vmem:[#allocation6 + $0x70] sm:$0xff]  }
 0x244   : > { %v2616_v33 = vld [vmem:[#allocation6 + $0x58] sm:$0xff]  }
 0x245   : > { %993 = vmatmul.mubr.bf16.vlgmr.msra.gmra.mrb[4].mxu1 %v639_v34  ;;  %1036 = vmatmul.mubr.bf16.vlgmr.msra.gmra.mrb[4].mxu0 %v639_v34  ;;  %v2617_v34 = vld [vmem:[#allocation6 + $0x60] sm:$0xff]  }
 0x246   : > { %2370 = vmatprep.mubr.msk.bf16.mxu1 %vm2959_vm0, %v3909_v38  ;;  %2376 = vmatprep.mubr.msk.bf16.mxu0 %vm2959_vm0, %v3909_v38 }
 0x247   : > { %2355 = vmatpush3.bf16.msra.mxu1 %v2613_v41  ;;  %v465_v41 = vlaneseq }
 0x248   : > { %2356 = vmatprep.subr.bf16.mxu1 %v3909_v38 }
 0x24b   : > { %2357 = vmatpush3.bf16.msra.mxu1 %v2614_v39  ;;  %v2620_v39 = vld [vmem:[#allocation6 + $0x78] sm:$0xff]  }
 0x24c   : > { %2358 = vmatprep.subr.bf16.mxu1 %v3909_v38 }
 0x24f   : > { %2359 = vmatpush3.bf16.msra.mxu1 %v2615_v36  ;;  %v466_v36 = vshrl.u32 %v465_v41, 7 }
 0x250   : > { %2360 = vmatprep.subr.bf16.mxu1 %v3909_v38 }
 0x251   : > { %v471_v32 = vsub.s32 1, %v466_v36  ;;  %v479_v18 = vsub.s32 3, %v466_v36 }
 0x253   : > { %2361 = vmatpush3.bf16.msra.mxu1 %v2616_v33  ;;  %v467_v33 = vsub.s32 0, %v466_v36 }
 0x254   : > { %2362 = vmatprep.subr.bf16.mxu1 %v3909_v38 }
 0x257   : > { %2363 = vmatpush3.bf16.msra.mxu1 %v2617_v34  ;;  %v464_v34 = vld [vmem:[%s3748_s5] sm:$0xf] }
 0x258   : > { %2364 = vmatprep.subr.bf16.mxu1 %v3909_v38  ;;  %v3442_v31 = vrot.slane %v464_v34, %v467_v33  ;;  %v3444_v29 = vrot.slane %v464_v34, %v471_v32  ;;  %v3450_v17 = vrot.slane %v464_v34, %v479_v18 }
 0x25a   : > { %3910 = vst [vmem:[#allocation66_spill] sm:$0xff] %v3442_v31  ;;  %3911 = vst [vmem:[#allocation67_spill] sm:$0xff] %v3444_v29 }
 0x25b   : > { %2365 = vmatpush3.bf16.msra.mxu1 %v2618_v35 }
 0x25c   : > { %2366 = vmatprep.subr.bf16.mxu1 %v3909_v38 }
 0x25f   : > { %2367 = vmatpush3.bf16.msra.mxu1 %v2619_v37 }
 0x260   : > { %2368 = vmatprep.subr.bf16.mxu1 %v3909_v38 }
 0x263   : > { %2369 = vmatpush3.bf16.msra.mxu1 %v2620_v39 }
 0x264   : > { %1242 = vmatprep.subr.bf16.mxu1 %v3317_v45 }
 0x318   : > { %v994_v35 = vpop.f32.mrb[4].mxu1  ;;  %v1037_v30 = vpop.f32.mrb[4].mxu0 }
 0x319   : > { %v1046_v37 = vadd.f32 %v994_v35, %v3442_v31  ;;  %v996_v28 = vpop.f32.mrb[5].mxu1  ;;  %v1039_v39 = vpop.f32.mrb[5].mxu0 }
 0x31a   : > { %v998_v27 = vpop.f32.mrb[6].mxu1  ;;  %v1041_v45 = vpop.f32.mrb[6].mxu0  ;;  %v1060_v23 = vadd.f32 %v996_v28, %v3444_v29 }
 0x31b   : > { %v2232_v26 = vmul.f32 -1.442695, %v1046_v37  ;;  %v1047_v41 = vadd.f32 %v998_v27, %v3442_v31  ;;  %v1000_v25 = vpop.f32.mrb[7].mxu1  ;;  %v1043_v24 = vpop.f32.mrb[7].mxu0  ;;  %v475_v27 = vsub.s32 2, %v466_v36 }
 0x31c   : > { %v1061_v22 = vadd.f32 %v1000_v25, %v3444_v29  ;;  %v2234_v32 = vmul.f32 -1.442695, %v1060_v23  ;;  %v1076_v23 = vadd.f32 %v1039_v39, %v3450_v17 }
 0x31d   : > { %2637 = vpow2.f32 %v2232_v26  ;;  %v2233_v33 = vmul.f32 -1.442695, %v1047_v41  ;;  %v3452_v28 = vrot.slane %v464_v34, %v475_v27 }
 0x31e   : > { %v2235_v21 = vmul.f32 -1.442695, %v1061_v22 }
 0x31f   : > { %2639 = vpow2.f32 %v2233_v33  ;;  %v1075_v36 = vadd.f32 %v1041_v45, %v3452_v28 }
 0x320   : > { %2641 = vpow2.f32 %v2234_v32 }
 0x321   : > { %2643 = vpow2.f32 %v2235_v21  ;;  %v1074_v21 = vadd.f32 %v1037_v30, %v3452_v28 }
 0x327   : > { %v2638_v35 = vpop.eup %2637 }
 0x328   : > { %v1054_v20 = vadd.f32 1.0, %v2638_v35 }
 0x329   : > { %v2640_v19 = vpop.eup %2639 }
 0x32a   : > { %2645 = vrcp.f32 %v1054_v20  ;;  %v1055_v37 = vadd.f32 1.0, %v2640_v19  ;;  %v2642_v31 = vpop.eup %2641  ;;  %v1077_v19 = vadd.f32 %v1043_v24, %v3450_v17 }
 0x32b   : > { %v2644_v26 = vpop.eup %2643  ;;  %v1068_v25 = vadd.f32 1.0, %v2642_v31 }
 0x32c   : > { %2647 = vrcp.f32 %v1055_v37  ;;  %v1069_v22 = vadd.f32 1.0, %v2644_v26 }
 0x32d   : > { %2649 = vrcp.f32 %v1068_v25 }
 0x32e   : > { %2651 = vrcp.f32 %v1069_v22 }
 0x334   : > { %v2646_v41 = vpop.eup %2645 }
 0x335   : > { %v1078_v33 = vmul.f32 %v2646_v41, %v1076_v23 }
 0x336   : > { %v2648_v20 = vpop.eup %2647 }
 0x337   : > { %v1080_v32 = vadd.f32 %v1078_v33, %v1074_v21  ;;  %v1079_v18 = vmul.f32 %v2648_v20, %v1077_v19  ;;  %v2650_v31 = vpop.eup %2649  ;;  %v3912_v20 = vld [vmem:[#allocation13_spill] sm:$0xff] }
 0x338   : > { %v2652_v35 = vpop.eup %2651  ;;  %v1084_v39 = vsub.f32 1.0, %v2650_v31  ;;  %v1088_v30 = vmul.f32 %v2650_v31, %v3216_v9  ;;  %v3917_v31 = vld [vmem:[#allocation18_spill] sm:$0xff] }
 0x339   : > { %2653 = vtanh.f32 %v1080_v32  ;;  %v1081_v34 = vadd.f32 %v1079_v18, %v1075_v36  ;;  %v1085_v27 = vsub.f32 1.0, %v2652_v35  ;;  %v1089_v24 = vmul.f32 %v2652_v35, %v3218_v10  ;;  %v3913_v32 = vld [vmem:[#allocation14_spill] sm:$0xff]  ;;  %v3914_v36 = vld [vmem:[#allocation15_spill] sm:$0xff]  ;;  %v3915_v18 = vld [vmem:[#allocation16_spill] sm:$0xff] }
 0x33a   : > { %v3918_v35 = vld [vmem:[#allocation19_spill] sm:$0xff] }
 0x33b   : > { %2655 = vtanh.f32 %v1081_v34  ;;  %v3916_v34 = vld [vmem:[#allocation17_spill] sm:$0xff] }
 0x343   : > { %v2654_v37 = vpop.eup %2653 }
 0x344   : > { %v1086_v26 = vmul.f32 %v2654_v37, %v1084_v39  ;;  %v3919_v39 = vld [vmem:[#allocation20_spill] sm:$0xff]  ;;  %v3920_v37 = vld [vmem:[#allocation21_spill] sm:$0xff] }
 0x345   : > { %v2656_v25 = vpop.eup %2655 }
 0x346   : > { %v1087_v23 = vmul.f32 %v2656_v25, %v1085_v27  ;;  %v3460_v41 = vadd.f32 %v1088_v30, %v1086_v26  ;;  %v3921_v27 = vld [vmem:[#allocation22_spill] sm:$0xff]  ;;  %v3922_v26 = vld [vmem:[#allocation23_spill] sm:$0xff]  ;;  %v3923_v30 = vld [vmem:[#allocation24_spill] sm:$0xff] }
 0x347   : > { %v3924_v25 = vld [vmem:[#allocation25_spill] sm:$0xff] }
 0x348   : > { %v3462_v45 = vadd.f32 %v1089_v24, %v1087_v23  ;;  %v3925_v23 = vld [vmem:[#allocation26_spill] sm:$0xff]  ;;  %v3926_v24 = vld [vmem:[#allocation27_spill] sm:$0xff] }
 0x34a   : > { %v1092_v22 = vpack.c.bf16 %v3462_v45, %v3460_v41 }
 0x34c   : > { %2371 = vmatmul.mubr.bf16.vlgmr.msra.gmra.mrb[8].mxu1 %v1092_v22 }
 0x34d   : > { %1274 = vmatprep.mubr.bf16.mxu1 %v1092_v22  ;;  %1243 = vmatpush1.bf16.msra.mxu1 %v3322_v49 }
 0x34e   : > { %1244 = vmatprep.subr.bf16.mxu1 %v3325_v50 }
 0x351   : > { %1245 = vmatpush1.bf16.msra.mxu1 %v3330_v51 }
 0x352   : > { %1246 = vmatprep.subr.bf16.mxu1 %v3334_v52 }
 0x355   : > { %1247 = vmatpush1.bf16.msra.mxu1 %v3337_v53 }
 0x356   : > { %1248 = vmatprep.subr.bf16.mxu1 %v3340_v54 }
 0x359   : > { %1249 = vmatpush1.bf16.msra.mxu1 %v3343_v55 }
 0x35a   : > { %1250 = vmatprep.subr.bf16.mxu1 %v3346_v56 }
 0x35d   : > { %1251 = vmatpush1.bf16.msra.mxu1 %v3349_v57 }
 0x35e   : > { %1252 = vmatprep.subr.bf16.mxu1 %v3352_v58 }
 0x361   : > { %1253 = vmatpush1.bf16.msra.mxu1 %v3355_v59 }
 0x362   : > { %1254 = vmatprep.subr.bf16.mxu1 %v3358_v60 }
 0x365   : > { %1255 = vmatpush1.bf16.msra.mxu1 %v3361_v61 }
 0x366   : > { %1256 = vmatprep.subr.bf16.mxu1 %v3364_v62 }
 0x369   : > { %1257 = vmatpush1.bf16.msra.mxu1 %v3367_v63 }
 0x36a   : > { %1258 = vmatprep.subr.bf16.mxu1 %v3370_v1 }
 0x36d   : > { %1259 = vmatpush1.bf16.msra.mxu1 %v3373_v2 }
 0x36e   : > { %1260 = vmatprep.subr.bf16.mxu1 %v3376_v3 }
 0x371   : > { %1261 = vmatpush1.bf16.msra.mxu1 %v3379_v4  ;;  %v2622_v4 = vld [vmem:[#allocation6 + $0x88] sm:$0xff]  }
 0x372   : > { %1262 = vmatprep.subr.bf16.mxu1 %v3382_v5  ;;  %v2621_v5 = vld [vmem:[#allocation6 + $0x80] sm:$0xff]  }
 0x375   : > { %1263 = vmatpush1.bf16.msra.mxu1 %v3385_v6 }
 0x376   : > { %1264 = vmatprep.subr.bf16.mxu1 %v3388_v7 }
 0x379   : > { %1265 = vmatpush1.bf16.msra.mxu1 %v3391_v8 }
 0x37a   : > { %1266 = vmatprep.subr.bf16.mxu1 %v3394_v11 }
 0x37d   : > { %1267 = vmatpush1.bf16.msra.mxu1 %v3397_v42 }
 0x37e   : > { %1268 = vmatprep.subr.bf16.mxu1 %v3400_v43  ;;  %v3938_v43 = vld [vmem:[#allocation65_spill] sm:$0xff] }
 0x381   : > { %1269 = vmatpush1.bf16.msra.mxu1 %v3403_v44  ;;  %v3937_v44 = vld [vmem:[#allocation63_spill] sm:$0xff] }
 0x382   : > { %1270 = vmatprep.subr.bf16.mxu1 %v3406_v46  ;;  %v3936_v46 = vld [vmem:[#allocation37_spill] sm:$0xff] }
 0x385   : > { %1271 = vmatpush1.bf16.msra.mxu1 %v3409_v47  ;;  %v3935_v47 = vld [vmem:[#allocation36_spill] sm:$0xff] }
 0x386   : > { %1272 = vmatprep.subr.bf16.mxu1 %v3413_v0  ;;  %v3934_v0 = vld [vmem:[#allocation35_spill] sm:$0xff] }
 0x389   : > { %1273 = vmatpush1.bf16.msra.mxu1 %v3417_v40  ;;  %v3933_v40 = vld [vmem:[#allocation34_spill] sm:$0xff] }
 0x38a   : > { %2380 = vmatprep.subr.bf16.mxu1 %v3909_v38 }
 0x41f   : > { %v1192_v9 = vpop.f32.mrb[8].mxu1 }
 0x420   : > { %v2372_v10 = vpop.f32.mrb[9].mxu1 }
 0x421   : > { %v1195_v21 = vpop.f32.mrb[10].mxu1  ;;  %v3929_v10 = vld [vmem:[#allocation30_spill] sm:$0xff] }
 0x422   : > { %v1199_v33 = vpack.c.bf16 %v1195_v21, %v1192_v9  ;;  %v2373_v19 = vpop.f32.mrb[11].mxu1  ;;  %v3928_v9 = vld [vmem:[#allocation29_spill] sm:$0xff]  ;;  %v3930_v21 = vld [vmem:[#allocation31_spill] sm:$0xff] }
 0x423   : > { %v3932_v19 = vld [vmem:[#allocation33_spill] sm:$0xff] }
 0x424   : > { %2375 = vmatpush3.bf16.msra.mxu0 %v1199_v33  ;;  %v3931_v33 = vld [vmem:[#allocation32_spill] sm:$0xff] }
 0x425   : > { %1285 = vmatprep.subr.bf16.mxu0 %v3227_v12 }
 0x427   : > { %2377 = vmatmul.mubr.msk.bf16.vlgmr.msra.gmra.mrb[8].mxu0 %vm594_vm1, %v3320_v48 }
 0x428   : > { %1317 = vmatprep.mubr.bf16.mxu0 %v1092_v22  ;;  %1286 = vmatpush1.bf16.msra.mxu0 %v3229_v13  ;;  %v3927_v22 = vld [vmem:[#allocation28_spill] sm:$0xff] }
 0x429   : > { %1287 = vmatprep.subr.bf16.mxu0 %v3232_v14 }
 0x42c   : > { %1288 = vmatpush1.bf16.msra.mxu0 %v3236_v15 }
 0x42d   : > { %1289 = vmatprep.subr.bf16.mxu0 %v3238_v16 }
 0x430   : > { %1290 = vmatpush1.bf16.msra.mxu0 %v3912_v20 }
 0x431   : > { %1291 = vmatprep.subr.bf16.mxu0 %v3913_v32 }
 0x434   : > { %1292 = vmatpush1.bf16.msra.mxu0 %v3914_v36 }
 0x435   : > { %1293 = vmatprep.subr.bf16.mxu0 %v3915_v18 }
 0x438   : > { %1294 = vmatpush1.bf16.msra.mxu0 %v3916_v34 }
 0x439   : > { %1295 = vmatprep.subr.bf16.mxu0 %v3917_v31 }
 0x43c   : > { %1296 = vmatpush1.bf16.msra.mxu0 %v3918_v35 }
 0x43d   : > { %1297 = vmatprep.subr.bf16.mxu0 %v3919_v39 }
 0x440   : > { %1298 = vmatpush1.bf16.msra.mxu0 %v3920_v37 }
 0x441   : > { %1299 = vmatprep.subr.bf16.mxu0 %v3921_v27 }
 0x444   : > { %1300 = vmatpush1.bf16.msra.mxu0 %v3922_v26 }
 0x445   : > { %1301 = vmatprep.subr.bf16.mxu0 %v3923_v30 }
 0x448   : > { %1302 = vmatpush1.bf16.msra.mxu0 %v3924_v25 }
 0x449   : > { %1303 = vmatprep.subr.bf16.mxu0 %v3925_v23 }
 0x44c   : > { %1304 = vmatpush1.bf16.msra.mxu0 %v3926_v24 }
 0x44d   : > { %1305 = vmatprep.subr.bf16.mxu0 %v3927_v22 }
 0x450   : > { %1306 = vmatpush1.bf16.msra.mxu0 %v3928_v9 }
 0x451   : > { %1307 = vmatprep.subr.bf16.mxu0 %v3929_v10 }
 0x454   : > { %1308 = vmatpush1.bf16.msra.mxu0 %v3930_v21 }
 0x455   : > { %1309 = vmatprep.subr.bf16.mxu0 %v3931_v33 }
 0x458   : > { %1310 = vmatpush1.bf16.msra.mxu0 %v3932_v19 }
 0x459   : > { %1311 = vmatprep.subr.bf16.mxu0 %v3933_v40 }
 0x45c   : > { %1312 = vmatpush1.bf16.msra.mxu0 %v3934_v0 }
 0x45d   : > { %1313 = vmatprep.subr.bf16.mxu0 %v3935_v47 }
 0x460   : > { %1314 = vmatpush1.bf16.msra.mxu0 %v3936_v46 }
 0x461   : > { %1315 = vmatprep.subr.bf16.mxu0 %v3937_v44 }
 0x464   : > { %1316 = vmatpush1.bf16.msra.mxu0 %v3938_v43 }
 0x465   : > { %2400 = vmatprep.subr.bf16.mxu0 %v3909_v38 }
 0x4fa   : > { %v1234_v42 = vpop.f32.mrb[8].mxu0 }
 0x4fb   : > { %v2378_v11 = vpop.f32.mrb[9].mxu0 }
 0x4fc   : > { %v1237_v8 = vpop.f32.mrb[10].mxu0  ;;  %v2623_v11 = vld [vmem:[#allocation6 + $0x90] sm:$0xff]  }
 0x4fd   : > { %v1241_v7 = vpack.c.bf16 %v1237_v8, %v1234_v42  ;;  %v2379_v6 = vpop.f32.mrb[11].mxu0  ;;  %v2626_v8 = vld [vmem:[#allocation6 + $0xa8] sm:$0xff]  }
 0x4fe   : > { %v2624_v6 = vld [vmem:[#allocation6 + $0x98] sm:$0xff]  }
 0x4ff   : > { %1275 = vmatmul.mubr.bf16.vlgmr.msra.gmra.mrb[12].mxu1 %v1241_v7  ;;  %1318 = vmatmul.mubr.bf16.vlgmr.msra.gmra.mrb[12].mxu0 %v1241_v7  ;;  %v2625_v7 = vld [vmem:[#allocation6 + $0xa0] sm:$0xff]  }
 0x500   : > { %2396 = vmatprep.mubr.msk.bf16.mxu1 %vm2959_vm0, %v3909_v38  ;;  %2402 = vmatprep.mubr.msk.bf16.mxu0 %vm2959_vm0, %v3909_v38 }
 0x501   : > { %2381 = vmatpush3.bf16.msra.mxu1 %v2621_v5  ;;  %v2627_v5 = vld [vmem:[#allocation6 + $0xb0] sm:$0xff]  }
 0x502   : > { %2382 = vmatprep.subr.bf16.mxu1 %v3909_v38 }
 0x505   : > { %2383 = vmatpush3.bf16.msra.mxu1 %v2622_v4  ;;  %v2628_v4 = vld [vmem:[#allocation6 + $0xb8] sm:$0xff]  }
 0x506   : > { %2384 = vmatprep.subr.bf16.mxu1 %v3909_v38 }
 0x509   : > { %2385 = vmatpush3.bf16.msra.mxu1 %v2623_v11 }
 0x50a   : > { %2386 = vmatprep.subr.bf16.mxu1 %v3909_v38 }
 0x50d   : > { %2387 = vmatpush3.bf16.msra.mxu1 %v2624_v6  ;;  %v3939_v6 = vld [vmem:[#allocation66_spill] sm:$0xff] }
 0x50e   : > { %2388 = vmatprep.subr.bf16.mxu1 %v3909_v38 }
 0x511   : > { %2389 = vmatpush3.bf16.msra.mxu1 %v2625_v7 }
 0x512   : > { %2390 = vmatprep.subr.bf16.mxu1 %v3909_v38 }
 0x515   : > { %2391 = vmatpush3.bf16.msra.mxu1 %v2626_v8 }
 0x516   : > { %2392 = vmatprep.subr.bf16.mxu1 %v3909_v38 }
 0x519   : > { %2393 = vmatpush3.bf16.msra.mxu1 %v2627_v5 }
 0x51a   : > { %2394 = vmatprep.subr.bf16.mxu1 %v3909_v38 }
 0x51d   : > { %2395 = vmatpush3.bf16.msra.mxu1 %v2628_v4 }
 0x51e   : > { %1567 = vmatprep.subr.bf16.mxu1 %v3227_v12 }
 0x5d2   : > { %v1276_v42 = vpop.f32.mrb[12].mxu1  ;;  %v1319_v11 = vpop.f32.mrb[12].mxu0 }
 0x5d3   : > { %v1328_v3 = vadd.f32 %v1276_v42, %v3939_v6  ;;  %v1278_v2 = vpop.f32.mrb[13].mxu1  ;;  %v1321_v7 = vpop.f32.mrb[13].mxu0 }
 0x5d4   : > { %v1280_v1 = vpop.f32.mrb[14].mxu1  ;;  %v1323_v63 = vpop.f32.mrb[14].mxu0  ;;  %v1342_v5 = vadd.f32 %v1278_v2, %v3444_v29  ;;  %v1358_v2 = vadd.f32 %v1321_v7, %v3450_v17 }
 0x5d5   : > { %v2245_v62 = vmul.f32 -1.442695, %v1328_v3  ;;  %v1329_v8 = vadd.f32 %v1280_v1, %v3939_v6  ;;  %v1282_v61 = vpop.f32.mrb[15].mxu1  ;;  %v1325_v60 = vpop.f32.mrb[15].mxu0 }
 0x5d6   : > { %v1343_v4 = vadd.f32 %v1282_v61, %v3444_v29  ;;  %v2247_v12 = vmul.f32 -1.442695, %v1342_v5  ;;  %v1356_v61 = vadd.f32 %v1319_v11, %v3452_v28  ;;  %v1359_v5 = vadd.f32 %v1325_v60, %v3450_v17 }
 0x5d7   : > { %2657 = vpow2.f32 %v2245_v62  ;;  %v2246_v59 = vmul.f32 -1.442695, %v1329_v8 }
 0x5d8   : > { %v2248_v58 = vmul.f32 -1.442695, %v1343_v4 }
 0x5d9   : > { %2659 = vpow2.f32 %v2246_v59 }
 0x5da   : > { %2661 = vpow2.f32 %v2247_v12  ;;  %v1357_v12 = vadd.f32 %v1323_v63, %v3452_v28 }
 0x5db   : > { %2663 = vpow2.f32 %v2248_v58 }
 0x5e1   : > { %v2658_v42 = vpop.eup %2657 }
 0x5e2   : > { %v1336_v57 = vadd.f32 1.0, %v2658_v42 }
 0x5e3   : > { %v2660_v56 = vpop.eup %2659 }
 0x5e4   : > { %2665 = vrcp.f32 %v1336_v57  ;;  %v1337_v3 = vadd.f32 1.0, %v2660_v56  ;;  %v2662_v1 = vpop.eup %2661 }
 0x5e5   : > { %v2664_v6 = vpop.eup %2663  ;;  %v1350_v55 = vadd.f32 1.0, %v2662_v1 }
 0x5e6   : > { %2667 = vrcp.f32 %v1337_v3  ;;  %v1351_v62 = vadd.f32 1.0, %v2664_v6 }
 0x5e7   : > { %2669 = vrcp.f32 %v1350_v55 }
 0x5e8   : > { %2671 = vrcp.f32 %v1351_v62 }
 0x5ee   : > { %v2666_v8 = vpop.eup %2665 }
 0x5ef   : > { %v1360_v59 = vmul.f32 %v2666_v8, %v1358_v2 }
 0x5f0   : > { %v2668_v58 = vpop.eup %2667 }
 0x5f1   : > { %v1362_v4 = vadd.f32 %v1360_v59, %v1356_v61  ;;  %v1361_v56 = vmul.f32 %v2668_v58, %v1359_v5  ;;  %v2670_v42 = vpop.eup %2669  ;;  %v2632_v61 = vld [vmem:[#allocation6 + $0xd8] sm:$0xff]   ;;  %v2633_v59 = vld [vmem:[#allocation6 + $0xe0] sm:$0xff]   ;;  %v2634_v5 = vld [vmem:[#allocation6 + $0xe8] sm:$0xff]  }
 0x5f2   : > { %v2672_v3 = vpop.eup %2671  ;;  %v1366_v7 = vsub.f32 1.0, %v2670_v42  ;;  %v1370_v55 = vmul.f32 %v2670_v42, %v3460_v41  ;;  %v3940_v41 = vld [vmem:[#allocation38_spill] sm:$0xff] }
 0x5f3   : > { %2673 = vtanh.f32 %v1362_v4  ;;  %v1363_v57 = vadd.f32 %v1361_v56, %v1357_v12  ;;  %v1367_v1 = vsub.f32 1.0, %v2672_v3  ;;  %v1371_v60 = vmul.f32 %v2672_v3, %v3462_v45  ;;  %v3952_v45 = vld [vmem:[#allocation50_spill] sm:$0xff]  ;;  %v2636_v4 = vld [vmem:[#allocation6 + $0xf8] sm:$0xff]  }
 0x5f4   : > { %v2635_v58 = vld [vmem:[#allocation6 + $0xf0] sm:$0xff]   ;;  %v2731_v12 = vld [vmem:[#allocation8 + $0xc] ss:$16 sps:$4 sm:$0xff]  }
 0x5f5   : > { %2675 = vtanh.f32 %v1363_v57  ;;  %v3966_v42 = vld [vmem:[#allocation66_spill] sm:$0xff] }
 0x5fd   : > { %v2674_v6 = vpop.eup %2673 }
 0x5fe   : > { %v1368_v29 = vmul.f32 %v2674_v6, %v1366_v7 }
 0x5ff   : > { %v2676_v11 = vpop.eup %2675 }
 0x600   : > { %v1369_v2 = vmul.f32 %v2676_v11, %v1367_v1  ;;  %v3555_v8 = vadd.f32 %v1370_v55, %v1368_v29 }
 0x602   : > { %v3557_v63 = vadd.f32 %v1371_v60, %v1369_v2 }
 0x604   : > { %v1374_v62 = vpack.c.bf16 %v3557_v63, %v3555_v8 }
 0x606   : > { %2397 = vmatmul.mubr.bf16.vlgmr.msra.gmra.mrb[16].mxu1 %v1374_v62 }
 0x607   : > { %1599 = vmatprep.mubr.bf16.mxu1 %v1374_v62  ;;  %1568 = vmatpush1.bf16.msra.mxu1 %v3229_v13 }
 0x608   : > { %1569 = vmatprep.subr.bf16.mxu1 %v3232_v14 }
 0x60b   : > { %1570 = vmatpush1.bf16.msra.mxu1 %v3236_v15 }
 0x60c   : > { %1571 = vmatprep.subr.bf16.mxu1 %v3238_v16 }
 0x60f   : > { %1572 = vmatpush1.bf16.msra.mxu1 %v3912_v20  ;;  %v3953_v20 = vld [vmem:[#allocation51_spill] sm:$0xff] }
 0x610   : > { %1573 = vmatprep.subr.bf16.mxu1 %v3913_v32  ;;  %v3954_v32 = vld [vmem:[#allocation52_spill] sm:$0xff] }
 0x613   : > { %1574 = vmatpush1.bf16.msra.mxu1 %v3914_v36  ;;  %v3955_v36 = vld [vmem:[#allocation53_spill] sm:$0xff] }
 0x614   : > { %1575 = vmatprep.subr.bf16.mxu1 %v3915_v18  ;;  %v3956_v18 = vld [vmem:[#allocation54_spill] sm:$0xff] }
 0x617   : > { %1576 = vmatpush1.bf16.msra.mxu1 %v3916_v34  ;;  %v3957_v34 = vld [vmem:[#allocation55_spill] sm:$0xff] }
 0x618   : > { %1577 = vmatprep.subr.bf16.mxu1 %v3917_v31  ;;  %v3958_v31 = vld [vmem:[#allocation56_spill] sm:$0xff] }
 0x61b   : > { %1578 = vmatpush1.bf16.msra.mxu1 %v3918_v35  ;;  %v3959_v35 = vld [vmem:[#allocation57_spill] sm:$0xff] }
 0x61c   : > { %1579 = vmatprep.subr.bf16.mxu1 %v3919_v39  ;;  %v3960_v39 = vld [vmem:[#allocation58_spill] sm:$0xff] }
 0x61f   : > { %1580 = vmatpush1.bf16.msra.mxu1 %v3920_v37  ;;  %v3961_v37 = vld [vmem:[#allocation59_spill] sm:$0xff] }
 0x620   : > { %1581 = vmatprep.subr.bf16.mxu1 %v3921_v27  ;;  %v3962_v27 = vld [vmem:[#allocation60_spill] sm:$0xff] }
 0x623   : > { %1582 = vmatpush1.bf16.msra.mxu1 %v3922_v26  ;;  %v3963_v26 = vld [vmem:[#allocation61_spill] sm:$0xff] }
 0x624   : > { %1583 = vmatprep.subr.bf16.mxu1 %v3923_v30  ;;  %v3964_v30 = vld [vmem:[#allocation62_spill] sm:$0xff] }
 0x627   : > { %1584 = vmatpush1.bf16.msra.mxu1 %v3924_v25  ;;  %v3965_v25 = vld [vmem:[#allocation64_spill] sm:$0xff] }
 0x628   : > { %1585 = vmatprep.subr.bf16.mxu1 %v3925_v23 }
 0x62b   : > { %1586 = vmatpush1.bf16.msra.mxu1 %v3926_v24 }
 0x62c   : > { %1587 = vmatprep.subr.bf16.mxu1 %v3927_v22 }
 0x62f   : > { %1588 = vmatpush1.bf16.msra.mxu1 %v3928_v9 }
 0x630   : > { %1589 = vmatprep.subr.bf16.mxu1 %v3929_v10 }
 0x633   : > { %1590 = vmatpush1.bf16.msra.mxu1 %v3930_v21  ;;  %v2629_v21 = vld [vmem:[#allocation6 + $0xc0] sm:$0xff]  }
 0x634   : > { %1591 = vmatprep.subr.bf16.mxu1 %v3931_v33  ;;  %v2630_v33 = vld [vmem:[#allocation6 + $0xc8] sm:$0xff]  }
 0x637   : > { %1592 = vmatpush1.bf16.msra.mxu1 %v3932_v19  ;;  %v2631_v19 = vld [vmem:[#allocation6 + $0xd0] sm:$0xff]  }
 0x638   : > { %1593 = vmatprep.subr.bf16.mxu1 %v3933_v40  ;;  %v3942_v40 = vld [vmem:[#allocation40_spill] sm:$0xff] }
 0x63b   : > { %1594 = vmatpush1.bf16.msra.mxu1 %v3934_v0  ;;  %v3941_v0 = vld [vmem:[#allocation39_spill] sm:$0xff] }
 0x63c   : > { %1595 = vmatprep.subr.bf16.mxu1 %v3935_v47  ;;  %v3945_v47 = vld [vmem:[#allocation43_spill] sm:$0xff] }
 0x63f   : > { %1596 = vmatpush1.bf16.msra.mxu1 %v3936_v46  ;;  %v3943_v46 = vld [vmem:[#allocation41_spill] sm:$0xff] }
 0x640   : > { %1597 = vmatprep.subr.bf16.mxu1 %v3937_v44 }
 0x643   : > { %1598 = vmatpush1.bf16.msra.mxu1 %v3938_v43 }
 0x644   : > { %2426 = vmatprep.subr.bf16.mxu1 %v3909_v38 }
 0x6d9   : > { %v1474_v13 = vpop.f32.mrb[16].mxu1 }
 0x6da   : > { %v2398_v14 = vpop.f32.mrb[17].mxu1 }
 0x6db   : > { %v1477_v15 = vpop.f32.mrb[18].mxu1 }
 0x6dc   : > { %v1481_v16 = vpack.c.bf16 %v1477_v15, %v1474_v13  ;;  %v2399_v29 = vpop.f32.mrb[19].mxu1  ;;  %v3967_v13 = vld [vmem:[#allocation67_spill] sm:$0xff] }
 0x6de   : > { %2401 = vmatpush3.bf16.msra.mxu0 %v1481_v16 }
 0x6df   : > { %1524 = vmatprep.subr.bf16.mxu0 %v3940_v41 }
 0x6e1   : > { %2403 = vmatmul.mubr.msk.bf16.vlgmr.msra.gmra.mrb[16].mxu0 %vm594_vm1, %v3320_v48  ;;  %v3944_v48 = vld [vmem:[#allocation42_spill] sm:$0xff] }
 0x6e2   : > { %1556 = vmatprep.mubr.bf16.mxu0 %v1374_v62  ;;  %1525 = vmatpush1.bf16.msra.mxu0 %v3322_v49  ;;  %v3946_v49 = vld [vmem:[#allocation44_spill] sm:$0xff] }
 0x6e3   : > { %1526 = vmatprep.subr.bf16.mxu0 %v3325_v50  ;;  %v3947_v50 = vld [vmem:[#allocation45_spill] sm:$0xff] }
 0x6e6   : > { %1527 = vmatpush1.bf16.msra.mxu0 %v3330_v51  ;;  %v3948_v51 = vld [vmem:[#allocation46_spill] sm:$0xff] }
 0x6e7   : > { %1528 = vmatprep.subr.bf16.mxu0 %v3334_v52  ;;  %v3949_v52 = vld [vmem:[#allocation47_spill] sm:$0xff] }
 0x6ea   : > { %1529 = vmatpush1.bf16.msra.mxu0 %v3337_v53  ;;  %v3950_v53 = vld [vmem:[#allocation48_spill] sm:$0xff] }
 0x6eb   : > { %1530 = vmatprep.subr.bf16.mxu0 %v3340_v54  ;;  %v3951_v54 = vld [vmem:[#allocation49_spill] sm:$0xff] }
 0x6ee   : > { %1531 = vmatpush1.bf16.msra.mxu0 %v3941_v0 }
 0x6ef   : > { %1532 = vmatprep.subr.bf16.mxu0 %v3942_v40 }
 0x6f2   : > { %1533 = vmatpush1.bf16.msra.mxu0 %v3943_v46 }
 0x6f3   : > { %1534 = vmatprep.subr.bf16.mxu0 %v3944_v48 }
 0x6f6   : > { %1535 = vmatpush1.bf16.msra.mxu0 %v3945_v47 }
 0x6f7   : > { %1536 = vmatprep.subr.bf16.mxu0 %v3946_v49 }
 0x6fa   : > { %1537 = vmatpush1.bf16.msra.mxu0 %v3947_v50 }
 0x6fb   : > { %1538 = vmatprep.subr.bf16.mxu0 %v3948_v51 }
 0x6fe   : > { %1539 = vmatpush1.bf16.msra.mxu0 %v3949_v52 }
 0x6ff   : > { %1540 = vmatprep.subr.bf16.mxu0 %v3950_v53 }
 0x702   : > { %1541 = vmatpush1.bf16.msra.mxu0 %v3951_v54 }
 0x703   : > { %1542 = vmatprep.subr.bf16.mxu0 %v3952_v45 }
 0x706   : > { %1543 = vmatpush1.bf16.msra.mxu0 %v3953_v20 }
 0x707   : > { %1544 = vmatprep.subr.bf16.mxu0 %v3954_v32 }
 0x70a   : > { %1545 = vmatpush1.bf16.msra.mxu0 %v3955_v36 }
 0x70b   : > { %1546 = vmatprep.subr.bf16.mxu0 %v3956_v18 }
 0x70e   : > { %1547 = vmatpush1.bf16.msra.mxu0 %v3957_v34 }
 0x70f   : > { %1548 = vmatprep.subr.bf16.mxu0 %v3958_v31 }
 0x712   : > { %1549 = vmatpush1.bf16.msra.mxu0 %v3959_v35 }
 0x713   : > { %1550 = vmatprep.subr.bf16.mxu0 %v3960_v39 }
 0x716   : > { %1551 = vmatpush1.bf16.msra.mxu0 %v3961_v37 }
 0x717   : > { %1552 = vmatprep.subr.bf16.mxu0 %v3962_v27 }
 0x71a   : > { %1553 = vmatpush1.bf16.msra.mxu0 %v3963_v26 }
 0x71b   : > { %1554 = vmatprep.subr.bf16.mxu0 %v3964_v30 }
 0x71e   : > { %1555 = vmatpush1.bf16.msra.mxu0 %v3965_v25 }
 0x71f   : > { %2406 = vmatprep.subr.bf16.mxu0 %v3909_v38 }
 0x7b4   : > { %v1516_v23 = vpop.f32.mrb[16].mxu0 }
 0x7b5   : > { %v2404_v24 = vpop.f32.mrb[17].mxu0 }
 0x7b6   : > { %v1519_v22 = vpop.f32.mrb[18].mxu0 }
 0x7b7   : > { %v1523_v9 = vpack.c.bf16 %v1519_v22, %v1516_v23  ;;  %v2405_v10 = vpop.f32.mrb[19].mxu0 }
 0x7b9   : > { %1557 = vmatmul.mubr.bf16.vlgmr.msra.gmra.mrb[20].mxu0 %v1523_v9  ;;  %1600 = vmatmul.mubr.bf16.vlgmr.msra.gmra.mrb[20].mxu1 %v1523_v9 }
 0x7ba   : > { %2422 = vmatprep.mubr.msk.bf16.mxu0 %vm2959_vm0, %v3909_v38  ;;  %2428 = vmatprep.mubr.msk.bf16.mxu1 %vm2959_vm0, %v3909_v38 }
 0x7bb   : > { %2407 = vmatpush3.bf16.msra.mxu0 %v2629_v21 }
 0x7bc   : > { %2408 = vmatprep.subr.bf16.mxu0 %v3909_v38 }
 0x7bf   : > { %2409 = vmatpush3.bf16.msra.mxu0 %v2630_v33  ;;  %v2732_v33 = vld [vmem:[#allocation8 + $0x8] ss:$16 sps:$4 sm:$0xff]  }
 0x7c0   : > { %2410 = vmatprep.subr.bf16.mxu0 %v3909_v38 }
 0x7c3   : > { %2411 = vmatpush3.bf16.msra.mxu0 %v2631_v19  ;;  %v2733_v19 = vld [vmem:[#allocation8 + $0x2c] ss:$16 sps:$4 sm:$0xff]  }
 0x7c4   : > { %2412 = vmatprep.subr.bf16.mxu0 %v3909_v38 }
 0x7c7   : > { %2413 = vmatpush3.bf16.msra.mxu0 %v2632_v61  ;;  %v2735_v61 = vld [vmem:[#allocation8 + $0x4c] ss:$16 sps:$4 sm:$0xff]  }
 0x7c8   : > { %2414 = vmatprep.subr.bf16.mxu0 %v3909_v38 }
 0x7cb   : > { %2415 = vmatpush3.bf16.msra.mxu0 %v2633_v59  ;;  %v2737_v59 = vld [vmem:[#allocation8 + $0x6c] ss:$16 sps:$4 sm:$0xff]  }
 0x7cc   : > { %2416 = vmatprep.subr.bf16.mxu0 %v3909_v38 }
 0x7cf   : > { %2417 = vmatpush3.bf16.msra.mxu0 %v2634_v5  ;;  %v2738_v5 = vld [vmem:[#allocation8 + $0x68] ss:$16 sps:$4 sm:$0xff]  }
 0x7d0   : > { %2418 = vmatprep.subr.bf16.mxu0 %v3909_v38 }
 0x7d3   : > { %2419 = vmatpush3.bf16.msra.mxu0 %v2635_v58  ;;  %v2739_v58 = vld [vmem:[#allocation8 + $0x8c] ss:$16 sps:$4 sm:$0xff]  }
 0x7d4   : > { %2420 = vmatprep.subr.bf16.mxu0 %v3909_v38 }
 0x7d7   : > { %2421 = vmatpush3.bf16.msra.mxu0 %v2636_v4  ;;  %v2740_v4 = vld [vmem:[#allocation8 + $0x88] ss:$16 sps:$4 sm:$0xff]  }
 0x7d8   : > { %1849 = vmatprep.subr.bf16.mxu0 %v2731_v12  ;;  %v2741_v12 = vld [vmem:[#allocation8 + $0xac] ss:$16 sps:$4 sm:$0xff]  }
 0x88c   : > { %v1558_v56 = vpop.f32.mrb[20].mxu0  ;;  %v1601_v57 = vpop.f32.mrb[20].mxu1 }
 0x88d   : > { %v1610_v3 = vadd.f32 %v1558_v56, %v3966_v42  ;;  %v1560_v7 = vpop.f32.mrb[21].mxu0  ;;  %v1603_v6 = vpop.f32.mrb[21].mxu1  ;;  %v1638_v53 = vadd.f32 %v1601_v57, %v3452_v28  ;;  %v2742_v56 = vld [vmem:[#allocation8 + $0xa8] ss:$16 sps:$4 sm:$0xff]   ;;  %v2743_v57 = vld [vmem:[#allocation8 + $0xcc] ss:$16 sps:$4 sm:$0xff]  }
 0x88e   : > { %v1562_v1 = vpop.f32.mrb[22].mxu0  ;;  %v1605_v55 = vpop.f32.mrb[22].mxu1  ;;  %v1624_v14 = vadd.f32 %v1560_v7, %v3967_v13  ;;  %v1640_v50 = vadd.f32 %v1603_v6, %v3450_v17  ;;  %v2745_v7 = vld [vmem:[#allocation8 + $0xec] ss:$16 sps:$4 sm:$0xff]   ;;  %v2746_v6 = vld [vmem:[#allocation8 + $0xe8] ss:$16 sps:$4 sm:$0xff]  }
 0x88f   : > { %v2258_v11 = vmul.f32 -1.442695, %v1610_v3  ;;  %v1611_v2 = vadd.f32 %v1562_v1, %v3966_v42  ;;  %v1564_v60 = vpop.f32.mrb[23].mxu0  ;;  %v1607_v62 = vpop.f32.mrb[23].mxu1  ;;  %v1639_v36 = vadd.f32 %v1605_v55, %v3452_v28  ;;  %v2744_v3 = vld [vmem:[#allocation8 + $0xc8] ss:$16 sps:$4 sm:$0xff]  }
 0x890   : > { %v1625_v15 = vadd.f32 %v1564_v60, %v3967_v13  ;;  %v2260_v16 = vmul.f32 -1.442695, %v1624_v14  ;;  %v1641_v45 = vadd.f32 %v1607_v62, %v3450_v17  ;;  %v2747_v1 = vld [vmem:[#allocation8 + $0x10c] ss:$16 sps:$4 sm:$0xff]   ;;  %v2748_v55 = vld [vmem:[#allocation8 + $0x108] ss:$16 sps:$4 sm:$0xff]  }
 0x891   : > { %2677 = vpow2.f32 %v2258_v11  ;;  %v2259_v38 = vmul.f32 -1.442695, %v1611_v2  ;;  %v2749_v11 = vld [vmem:[#allocation8 + $0x12c] ss:$16 sps:$4 sm:$0xff]   ;;  %v2750_v2 = vld [vmem:[#allocation8 + $0x128] ss:$16 sps:$4 sm:$0xff]  }
 0x892   : > { %v2261_v29 = vmul.f32 -1.442695, %v1625_v15  ;;  %v2751_v60 = vld [vmem:[#allocation8 + $0x14c] ss:$16 sps:$4 sm:$0xff]   ;;  %v2752_v62 = vld [vmem:[#allocation8 + $0x148] ss:$16 sps:$4 sm:$0xff]  }
 0x893   : > { %2679 = vpow2.f32 %v2259_v38  ;;  %v2753_v14 = vld [vmem:[#allocation8 + $0x16c] ss:$16 sps:$4 sm:$0xff]   ;;  %v2754_v38 = vld [vmem:[#allocation8 + $0x168] ss:$16 sps:$4 sm:$0xff]  }
 0x894   : > { %2681 = vpow2.f32 %v2260_v16  ;;  %v2755_v15 = vld [vmem:[#allocation8 + $0x18c] ss:$16 sps:$4 sm:$0xff]   ;;  %v2756_v16 = vld [vmem:[#allocation8 + $0x188] ss:$16 sps:$4 sm:$0xff]  }
 0x895   : > { %2683 = vpow2.f32 %v2261_v29  ;;  %v2757_v29 = vld [vmem:[#allocation8 + $0x1ac] ss:$16 sps:$4 sm:$0xff]  }
 0x89b   : > { %v2678_v41 = vpop.eup %2677 }
 0x89c   : > { %v1618_v0 = vadd.f32 1.0, %v2678_v41  ;;  %v2758_v41 = vld [vmem:[#allocation8 + $0x1a8] ss:$16 sps:$4 sm:$0xff]  }
 0x89d   : > { %v2680_v40 = vpop.eup %2679 }
 0x89e   : > { %2685 = vrcp.f32 %v1618_v0  ;;  %v1619_v46 = vadd.f32 1.0, %v2680_v40  ;;  %v2682_v48 = vpop.eup %2681  ;;  %v2759_v0 = vld [vmem:[#allocation8 + $0x1cc] ss:$16 sps:$4 sm:$0xff]   ;;  %v2760_v40 = vld [vmem:[#allocation8 + $0x1c8] ss:$16 sps:$4 sm:$0xff]  }
 0x89f   : > { %v2684_v47 = vpop.eup %2683  ;;  %v1632_v49 = vadd.f32 1.0, %v2682_v48 }
 0x8a0   : > { %2687 = vrcp.f32 %v1619_v46  ;;  %v1633_v51 = vadd.f32 1.0, %v2684_v47 }
 0x8a1   : > { %2689 = vrcp.f32 %v1632_v49 }
 0x8a2   : > { %2691 = vrcp.f32 %v1633_v51  ;;  %v2761_v51 = vld [vmem:[#allocation8 + $0x4] ss:$16 sps:$4 sm:$0xff]  }
 0x8a8   : > { %v2686_v52 = vpop.eup %2685 }
 0x8a9   : > { %v1642_v54 = vmul.f32 %v2686_v52, %v1640_v50  ;;  %v2762_v52 = vld [vmem:[%s3184_s26] sm:$0xff]   ;;  %s392_s26 = scalar_lea.vmem %s3745_s2, %s2282_s14  ;;  %s382_s14 = scalar_lea.vmem [#allocation9], %s3180_s16 }
 0x8aa   : > { %v2688_v20 = vpop.eup %2687  ;;  %s2033_s11 = sshll.u32 %s382_s14, 4  ;;  %s3702_s11 = int_to_ptr.vmem [resolvable:$true] %s2033_s11 }
 0x8ab   : > { %v1644_v32 = vadd.f32 %v1642_v54, %v1638_v53  ;;  %v1643_v18 = vmul.f32 %v2688_v20, %v1641_v45  ;;  %v2690_v31 = vpop.eup %2689  ;;  %v2763_v53 = vld [vmem:[#allocation8] ss:$16 sps:$4 sm:$0xff]   ;;  %v2764_v54 = vld [vmem:[#allocation8 + $0x24] ss:$16 sps:$4 sm:$0xff]   ;;  %s2879_s19 = scalar_lea.vmem %s3702_s11, 16  ;;  %p2886_p13 = scmp.lt.s32.totalorder %s3702_s11, %s2884_s27 }
 0x8ac   : > { %v2692_v35 = vpop.eup %2691  ;;  %v1648_v39 = vsub.f32 1.0, %v2690_v31  ;;  %v1652_v30 = vmul.f32 %v2690_v31, %v3555_v8  ;;  %v2734_v8 = vld [vmem:[#allocation8 + $0x28] ss:$16 sps:$4 sm:$0xff]   ;;  %v2767_v45 = vld [vmem:[#allocation8 + $0x40] ss:$16 sps:$4 sm:$0xff]   ;;  %p2880_p4 = scmp.ne.s32.totalorder %s3702_s11, %s2879_s19 }
 0x8ad   : > { %2693 = vtanh.f32 %v1644_v32  ;;  %v1645_v34 = vadd.f32 %v1643_v18, %v1639_v36  ;;  %v1649_v27 = vsub.f32 1.0, %v2692_v35  ;;  %v1653_v22 = vmul.f32 %v2692_v35, %v3557_v63  ;;  %v2736_v63 = vld [vmem:[#allocation8 + $0x48] ss:$16 sps:$4 sm:$0xff]   ;;  %v2768_v20 = vld [vmem:[#allocation8 + $0x64] ss:$16 sps:$4 sm:$0xff]  }
 0x8ae   : > { %v2769_v32 = vld [vmem:[#allocation8 + $0x60] ss:$16 sps:$4 sm:$0xff]   ;;  %v2770_v36 = vld [vmem:[#allocation8 + $0x84] ss:$16 sps:$4 sm:$0xff]   ;;  %p2881_p6 = pnand %p2880_p4, %p3128_p8 }
 0x8af   : > { %2695 = vtanh.f32 %v1645_v34  ;;  %v2771_v18 = vld [vmem:[#allocation8 + $0x80] ss:$16 sps:$4 sm:$0xff]   ;;  %v2772_v34 = vld [vmem:[#allocation8 + $0xa4] ss:$16 sps:$4 sm:$0xff]  }
 0x8b0   : > { %v2773_v31 = vld [vmem:[#allocation8 + $0xa0] ss:$16 sps:$4 sm:$0xff]   ;;  %v2774_v35 = vld [vmem:[#allocation8 + $0xc4] ss:$16 sps:$4 sm:$0xff]   ;;  %p2882_p11 = pneg %p2881_p6 }
 0x8b7   : > { %v2694_v37 = vpop.eup %2693 }
 0x8b8   : > { %v1650_v26 = vmul.f32 %v2694_v37, %v1648_v39  ;;  %v2775_v39 = vld [vmem:[#allocation8 + $0xc0] ss:$16 sps:$4 sm:$0xff]   ;;  %v2776_v37 = vld [vmem:[#allocation8 + $0xe4] ss:$16 sps:$4 sm:$0xff]  }
 0x8b9   : > { %v2696_v23 = vpop.eup %2695 }
 0x8ba   : > { %v1651_v24 = vmul.f32 %v2696_v23, %v1649_v27  ;;  %v3649_v9 = vadd.f32 %v1652_v30, %v1650_v26  ;;  %v2777_v27 = vld [vmem:[#allocation8 + $0xe0] ss:$16 sps:$4 sm:$0xff]   ;;  %v2778_v26 = vld [vmem:[#allocation8 + $0x104] ss:$16 sps:$4 sm:$0xff]  }
 0x8bb   : > { %v2779_v30 = vld [vmem:[#allocation8 + $0x100] ss:$16 sps:$4 sm:$0xff]   ;;  %v2780_v23 = vld [vmem:[#allocation8 + $0x124] ss:$16 sps:$4 sm:$0xff]  }
 0x8bc   : > { %v3651_v10 = vadd.f32 %v1653_v22, %v1651_v24  ;;  %v2781_v24 = vld [vmem:[#allocation8 + $0x120] ss:$16 sps:$4 sm:$0xff]   ;;  %v2782_v22 = vld [vmem:[#allocation8 + $0x144] ss:$16 sps:$4 sm:$0xff]  }
 0x8be   : > { %v3655_v21 = vpack.c.bf16 %v3651_v10, %v3649_v9 }
 0x8c0   : > { %2423 = vmatmul.mubr.bf16.vlgmr.msra.gmra.mrb[24].mxu0 %v3655_v21 }
 0x8c1   : > { %1881 = vmatprep.mubr.bf16.mxu0 %v3655_v21  ;;  %1850 = vmatpush1.bf16.msra.mxu0 %v2732_v33  ;;  %v2784_v33 = vld [vmem:[#allocation8 + $0x164] ss:$16 sps:$4 sm:$0xff]  }
 0x8c2   : > { %1851 = vmatprep.subr.bf16.mxu0 %v2733_v19  ;;  %v2785_v19 = vld [vmem:[#allocation8 + $0x160] ss:$16 sps:$4 sm:$0xff]  }
 0x8c5   : > { %1852 = vmatpush1.bf16.msra.mxu0 %v2734_v8  ;;  %v2786_v8 = vld [vmem:[#allocation8 + $0x184] ss:$16 sps:$4 sm:$0xff]  }
 0x8c6   : > { %1853 = vmatprep.subr.bf16.mxu0 %v2735_v61  ;;  %v2787_v61 = vld [vmem:[#allocation8 + $0x180] ss:$16 sps:$4 sm:$0xff]  }
 0x8c9   : > { %1854 = vmatpush1.bf16.msra.mxu0 %v2736_v63  ;;  %v2788_v63 = vld [vmem:[#allocation8 + $0x1a4] ss:$16 sps:$4 sm:$0xff]  }
 0x8ca   : > { %1855 = vmatprep.subr.bf16.mxu0 %v2737_v59  ;;  %v2789_v59 = vld [vmem:[#allocation8 + $0x1a0] ss:$16 sps:$4 sm:$0xff]  }
 0x8cd   : > { %1856 = vmatpush1.bf16.msra.mxu0 %v2738_v5  ;;  %v2790_v5 = vld [vmem:[#allocation8 + $0x1c4] ss:$16 sps:$4 sm:$0xff]  }
 0x8ce   : > { %1857 = vmatprep.subr.bf16.mxu0 %v2739_v58  ;;  %v2791_v58 = vld [vmem:[#allocation8 + $0x1c0] ss:$16 sps:$4 sm:$0xff]  }
 0x8d1   : > { %1858 = vmatpush1.bf16.msra.mxu0 %v2740_v4  ;;  %v2792_v4 = vld [vmem:[#allocation8 + $0x1e4] ss:$16 sps:$4 sm:$0xff]  }
 0x8d2   : > { %1859 = vmatprep.subr.bf16.mxu0 %v2741_v12 }
 0x8d5   : > { %1860 = vmatpush1.bf16.msra.mxu0 %v2742_v56 }
 0x8d6   : > { %1861 = vmatprep.subr.bf16.mxu0 %v2743_v57 }
 0x8d9   : > { %1862 = vmatpush1.bf16.msra.mxu0 %v2744_v3 }
 0x8da   : > { %1863 = vmatprep.subr.bf16.mxu0 %v2745_v7 }
 0x8dd   : > { %1864 = vmatpush1.bf16.msra.mxu0 %v2746_v6 }
 0x8de   : > { %1865 = vmatprep.subr.bf16.mxu0 %v2747_v1 }
 0x8e1   : > { %1866 = vmatpush1.bf16.msra.mxu0 %v2748_v55 }
 0x8e2   : > { %1867 = vmatprep.subr.bf16.mxu0 %v2749_v11 }
 0x8e5   : > { %1868 = vmatpush1.bf16.msra.mxu0 %v2750_v2 }
 0x8e6   : > { %1869 = vmatprep.subr.bf16.mxu0 %v2751_v60 }
 0x8e9   : > { %1870 = vmatpush1.bf16.msra.mxu0 %v2752_v62 }
 0x8ea   : > { %1871 = vmatprep.subr.bf16.mxu0 %v2753_v14 }
 0x8ed   : > { %1872 = vmatpush1.bf16.msra.mxu0 %v2754_v38 }
 0x8ee   : > { %1873 = vmatprep.subr.bf16.mxu0 %v2755_v15 }
 0x8f1   : > { %1874 = vmatpush1.bf16.msra.mxu0 %v2756_v16 }
 0x8f2   : > { %1875 = vmatprep.subr.bf16.mxu0 %v2757_v29 }
 0x8f5   : > { %1876 = vmatpush1.bf16.msra.mxu0 %v2758_v41 }
 0x8f6   : > { %1877 = vmatprep.subr.bf16.mxu0 %v2759_v0 }
 0x8f9   : > { %1878 = vmatpush1.bf16.msra.mxu0 %v2760_v40 }
 0x8fa   : > { %1879 = vmatprep.subr.bf16.mxu0 %v3937_v44  ;;  %v2765_v44 = vld [vmem:[#allocation8 + $0x20] ss:$16 sps:$4 sm:$0xff]  }
 0x8fd   : > { %1880 = vmatpush1.bf16.msra.mxu0 %v3938_v43  ;;  %v2766_v43 = vld [vmem:[#allocation8 + $0x44] ss:$16 sps:$4 sm:$0xff]  }
 0x993   : > { %v1756_v46 = vpop.f32.mrb[24].mxu0 }
 0x994   : > { %v2424_v48 = vpop.f32.mrb[25].mxu0 }
 0x995   : > { %v1759_v47 = vpop.f32.mrb[26].mxu0 }
 0x996   : > { %v1763_v49 = vpack.c.bf16 %v1759_v47, %v1756_v46  ;;  %v2425_v50 = vpop.f32.mrb[27].mxu0 }
 0x998   : > { %2427 = vmatpush3.bf16.msra.mxu1 %v1763_v49 }
 0x999   : > { %1806 = vmatprep.subr.bf16.mxu1 %v2761_v51 }
 0x99b   : > { %2429 = vmatmul.mubr.msk.bf16.vlgmr.msra.gmra.mrb[24].mxu1 %vm594_vm1, %v2762_v52 }
 0x99c   : > { %1838 = vmatprep.mubr.bf16.mxu1 %v3655_v21  ;;  %1807 = vmatpush1.bf16.msra.mxu1 %v2763_v53  ;;  %v2783_v21 = vld [vmem:[#allocation8 + $0x140] ss:$16 sps:$4 sm:$0xff]  }
 0x99d   : > { %1808 = vmatprep.subr.bf16.mxu1 %v2764_v54 }
 0x9a0   : > { %1809 = vmatpush1.bf16.msra.mxu1 %v2765_v44 }
 0x9a1   : > { %1810 = vmatprep.subr.bf16.mxu1 %v2766_v43 }
 0x9a4   : > { %1811 = vmatpush1.bf16.msra.mxu1 %v2767_v45 }
 0x9a5   : > { %1812 = vmatprep.subr.bf16.mxu1 %v2768_v20 }
 0x9a8   : > { %1813 = vmatpush1.bf16.msra.mxu1 %v2769_v32 }
 0x9a9   : > { %1814 = vmatprep.subr.bf16.mxu1 %v2770_v36 }
 0x9ac   : > { %1815 = vmatpush1.bf16.msra.mxu1 %v2771_v18 }
 0x9ad   : > { %1816 = vmatprep.subr.bf16.mxu1 %v2772_v34 }
 0x9b0   : > { %1817 = vmatpush1.bf16.msra.mxu1 %v2773_v31 }
 0x9b1   : > { %1818 = vmatprep.subr.bf16.mxu1 %v2774_v35 }
 0x9b4   : > { %1819 = vmatpush1.bf16.msra.mxu1 %v2775_v39 }
 0x9b5   : > { %1820 = vmatprep.subr.bf16.mxu1 %v2776_v37 }
 0x9b8   : > { %1821 = vmatpush1.bf16.msra.mxu1 %v2777_v27 }
 0x9b9   : > { %1822 = vmatprep.subr.bf16.mxu1 %v2778_v26 }
 0x9bc   : > { %1823 = vmatpush1.bf16.msra.mxu1 %v2779_v30 }
 0x9bd   : > { %1824 = vmatprep.subr.bf16.mxu1 %v2780_v23 }
 0x9c0   : > { %1825 = vmatpush1.bf16.msra.mxu1 %v2781_v24 }
 0x9c1   : > { %1826 = vmatprep.subr.bf16.mxu1 %v2782_v22 }
 0x9c4   : > { %1827 = vmatpush1.bf16.msra.mxu1 %v2783_v21 }
 0x9c5   : > { %1828 = vmatprep.subr.bf16.mxu1 %v2784_v33 }
 0x9c8   : > { %1829 = vmatpush1.bf16.msra.mxu1 %v2785_v19  ;;  %v1951_v19 = vstv %s1950_s28  ;;  %s2885_s28 = scalar_lea.vmem %s2884_s27, 32 }
 0x9c9   : > { %1830 = vmatprep.subr.bf16.mxu1 %v2786_v8  ;;  %p2887_p3 = scmp.lt.s32.totalorder %s2885_s28, %s2879_s19 }
 0x9cb   : > { %p2888_p7 = por %p2887_p3, %p2886_p13 }
 0x9cc   : > { %1831 = vmatpush1.bf16.msra.mxu1 %v2787_v61 }
 0x9cd   : > { %1832 = vmatprep.subr.bf16.mxu1 %v2788_v63  ;;  %p2889_p9 = pnand %p2888_p7, %p2882_p11 }
 0x9d0   : > { %1833 = vmatpush1.bf16.msra.mxu1 %v2789_v59 }
 0x9d1   : > { %1834 = vmatprep.subr.bf16.mxu1 %v2790_v5 }
 0x9d4   : > { %1835 = vmatpush1.bf16.msra.mxu1 %v2791_v58 }
 0x9d5   : > { %1836 = vmatprep.subr.bf16.mxu1 %v2792_v4 }
 0x9d8   : > { %1837 = vmatpush1.bf16.msra.mxu1 %v3965_v25 }
 0xa6e   : > { %v1798_v12 = vpop.f32.mrb[24].mxu1 }
 0xa6f   : > { %v2430_v56 = vpop.f32.mrb[25].mxu1 }
 0xa70   : > { %v1801_v57 = vpop.f32.mrb[26].mxu1 }
 0xa71   : > { %v1805_v3 = vpack.c.bf16 %v1801_v57, %v1798_v12  ;;  %v2431_v7 = vpop.f32.mrb[27].mxu1  ;;  %v398_v57 = vld [vmem:[%s392_s26] sm:$0xff] }
 0xa72   : > { %vm1966_vm2 = vcmp.gt.f32.partialorder %v398_v57, 0.0 }
 0xa73   : > { %1839 = vmatmul.mubr.bf16.vlgmr.msra.gmra.mrb[28].mxu1 %v1805_v3  ;;  %1882 = vmatmul.mubr.bf16.vlgmr.msra.gmra.mrb[28].mxu0 %v1805_v3  ;;  %v399_v3 = vld [vmem:[%s392_s26 + $0x8] sm:$0xff] }
 0xa74   : > { %vm1967_vm3 = vcmp.gt.f32.partialorder %v399_v3, 0.0 }
 0xb46   : > { %v1840_v6 = vpop.f32.mrb[28].mxu1  ;;  %v1883_v1 = vpop.f32.mrb[28].mxu0 }
 0xb47   : > { %v1892_v55 = vadd.f32 %v1840_v6, %v3966_v42  ;;  %v1842_v11 = vpop.f32.mrb[29].mxu1  ;;  %v1885_v2 = vpop.f32.mrb[29].mxu0 }
 0xb48   : > { %v1844_v60 = vpop.f32.mrb[30].mxu1  ;;  %v1887_v62 = vpop.f32.mrb[30].mxu0  ;;  %v1906_v16 = vadd.f32 %v1842_v11, %v3967_v13  ;;  %v1922_v52 = vadd.f32 %v1885_v2, %v3450_v17 }
 0xb49   : > { %v2271_v14 = vmul.f32 -1.442695, %v1892_v55  ;;  %v1893_v38 = vadd.f32 %v1844_v60, %v3966_v42  ;;  %v1846_v15 = vpop.f32.mrb[31].mxu1  ;;  %v1889_v25 = vpop.f32.mrb[31].mxu0  ;;  %v1921_v32 = vadd.f32 %v1887_v62, %v3452_v28 }
 0xb4a   : > { %v1907_v41 = vadd.f32 %v1846_v15, %v3967_v13  ;;  %v2273_v0 = vmul.f32 -1.442695, %v1906_v16  ;;  %v1920_v13 = vadd.f32 %v1883_v1, %v3452_v28  ;;  %v1923_v43 = vadd.f32 %v1889_v25, %v3450_v17  ;;  %v2275_v17 = vld [vmem:[%s3749_s6] ss:$0 sm:$0xff] }
 0xb4b   : > { %2697 = vpow2.f32 %v2271_v14  ;;  %v2272_v29 = vmul.f32 -1.442695, %v1893_v38 }
 0xb4c   : > { %v2274_v40 = vmul.f32 -1.442695, %v1907_v41 }
 0xb4d   : > { %2699 = vpow2.f32 %v2272_v29 }
 0xb4e   : > { %2701 = vpow2.f32 %v2273_v0 }
 0xb4f   : > { %2703 = vpow2.f32 %v2274_v40 }
 0xb55   : > { %v2698_v46 = vpop.eup %2697 }
 0xb56   : > { %v1900_v48 = vadd.f32 1.0, %v2698_v46 }
 0xb57   : > { %v2700_v47 = vpop.eup %2699 }
 0xb58   : > { %2705 = vrcp.f32 %v1900_v48  ;;  %v1901_v49 = vadd.f32 1.0, %v2700_v47  ;;  %v2702_v42 = vpop.eup %2701 }
 0xb59   : > { %v2704_v50 = vpop.eup %2703  ;;  %v1914_v51 = vadd.f32 1.0, %v2702_v42 }
 0xb5a   : > { %2707 = vrcp.f32 %v1901_v49  ;;  %v1915_v53 = vadd.f32 1.0, %v2704_v50 }
 0xb5b   : > { %2709 = vrcp.f32 %v1914_v51 }
 0xb5c   : > { %2711 = vrcp.f32 %v1915_v53 }
 0xb62   : > { %v2706_v54 = vpop.eup %2705 }
 0xb63   : > { %v1924_v44 = vmul.f32 %v2706_v54, %v1922_v52 }
 0xb64   : > { %v2708_v45 = vpop.eup %2707 }
 0xb65   : > { %v1926_v20 = vadd.f32 %v1924_v44, %v1920_v13  ;;  %v1925_v36 = vmul.f32 %v2708_v45, %v1923_v43  ;;  %v2710_v34 = vpop.eup %2709 }
 0xb66   : > { %v2712_v31 = vpop.eup %2711  ;;  %v1930_v35 = vsub.f32 1.0, %v2710_v34  ;;  %v1934_v27 = vmul.f32 %v2710_v34, %v3649_v9  ;;  %v2960_v9 = vmov 0  }
 0xb67   : > { %2713 = vtanh.f32 %v1926_v20  ;;  %v1927_v18 = vadd.f32 %v1925_v36, %v1921_v32  ;;  %v1931_v26 = vsub.f32 1.0, %v2712_v31  ;;  %v1935_v24 = vmul.f32 %v2712_v31, %v3651_v10  ;;  %2506 = vset.pattern.permute.xlu1 %v2960_v9  ;;  %2507 = vset.pattern.permute.xlu0 %v2960_v9 }
 0xb69   : > { %2715 = vtanh.f32 %v1927_v18 }
 0xb71   : > { %v2714_v39 = vpop.eup %2713 }
 0xb72   : > { %v1932_v37 = vmul.f32 %v2714_v39, %v1930_v35 }
 0xb73   : > { %v2716_v30 = vpop.eup %2715 }
 0xb74   : > { %v3677_v23 = vadd.f32 %v1934_v27, %v1932_v37  ;;  %v1933_v28 = vmul.f32 %v2716_v30, %v1931_v26 }
 0xb76   : > { %v1944_v22 = vmul.f32 %v2275_v17, %v3677_v23  ;;  %v3681_v21 = vadd.f32 %v1935_v24, %v1933_v28 }
 0xb78   : > { %1946 = vadd.xlane.f32.xlu0 %v1944_v22  ;;  %v1945_v33 = vmul.f32 %v2275_v17, %v3681_v21 }
 0xb7c   : > { %1948 = vadd.xlane.f32.xlu0 %v1945_v33 }
 0xc05   : > { %v1947_v8 = vpop.xlane.xlu0 %1946 }
 0xc06   : > { %v1952_v61 = vadd.f32 %v1951_v19, %v1947_v8 }
 0xc08   : > { %v2276_v63 = vmul.f32 -1.442695, %v1952_v61 }
 0xc09   : > { %v1949_v59 = vpop.xlane.xlu0 %1948 }
 0xc0a   : > { %2717 = vpow2.f32 %v2276_v63  ;;  %v1953_v10 = vadd.f32 %v1951_v19, %v1949_v59 }
 0xc0c   : > { %v2277_v5 = vmul.f32 -1.442695, %v1953_v10 }
 0xc0e   : > { %2719 = vpow2.f32 %v2277_v5 }
 0xc14   : > { %v2718_v58 = vpop.eup %2717 }
 0xc15   : > { %v1960_v4 = vadd.f32 1.0, %v2718_v58 }
 0xc17   : > { %2721 = vrcp.f32 %v1960_v4 }
 0xc18   : > { %v2720_v12 = vpop.eup %2719 }
 0xc19   : > { %v1961_v56 = vadd.f32 1.0, %v2720_v12 }
 0xc1b   : > { %2723 = vrcp.f32 %v1961_v56 }
 0xc21   : > { %v2722_v7 = vpop.eup %2721 }
 0xc22   : > { %v1968_v6 = vsel %vm1966_vm2, %v2722_v7, -1e+30 }
 0xc23   : > { %v1971_v11 = vsel %vm1970_vm4, %v1968_v6, -inf }
 0xc25   : > { %v2724_v1 = vpop.eup %2723 }
 0xc26   : > { %v1969_v55 = vsel %vm1967_vm3, %v2724_v1, -1e+30 }
 0xc27   : > { %v1972_v2 = vsel %vm1970_vm4, %v1969_v55, -inf }
 0xc28   : > { %v1973_v60 = vmax.f32 %v1971_v11, %v1972_v2 }
 0xc2a   : > { %v1974_v62 = vrot.slane %v1973_v60, 4 }
 0xc2c   : > { %v1975_v14 = vmax.f32 %v1973_v60, %v1974_v62 }
 0xc2e   : > { %v1976_v38 = vrot.slane %v1975_v14, 2 }
 0xc30   : > { %v1977_v15 = vmax.f32 %v1975_v14, %v1976_v38 }
 0xc32   : > { %v1978_v25 = vrot.slane %v1977_v15, 1 }
 0xc34   : > { %v1979_v16 = vmax.f32 %v1977_v15, %v1978_v25 }
 0xc36   : > { %v1980_v29 = vsub.f32 %v1968_v6, %v1979_v16  ;;  %v1981_v41 = vsub.f32 %v1969_v55, %v1979_v16 }
 0xc38   : > { %v1982_v0 = vmul.f32 1.442695, %v1980_v29  ;;  %v1984_v40 = vmul.f32 1.442695, %v1981_v41 }
 0xc3a   : > { %2725 = vpow2.f32 %v1982_v0 }
 0xc3b   : > { %2727 = vpow2.f32 %v1984_v40 }
 0xc44   : > { %v2726_v46 = vpop.eup %2725 }
 0xc45   : > { %v2728_v48 = vpop.eup %2727  ;;  %v1986_v47 = vmul.f32 %v2726_v46, %v398_v57 }
 0xc46   : > { %v1987_v49 = vmul.f32 %v2728_v48, %v399_v3 }
 0xc47   : > { %v1988_v42 = vsel %vm1970_vm4, %v1986_v47, 0.0 }
 0xc48   : > { %v1989_v50 = vsel %vm1970_vm4, %v1987_v49, 0.0 }
 0xc49   : > { %v1990_v51 = vadd.f32 %v1989_v50, %v1988_v42 }
 0xc4b   : > { %v1991_v52 = vrot.slane %v1990_v51, 4 }
 0xc4d   : > { %v1992_v53 = vadd.f32 %v1991_v52, %v1990_v51 }
 0xc4f   : > { %v1993_v54 = vrot.slane %v1992_v53, 2 }
 0xc51   : > { %v1994_v13 = vadd.f32 %v1993_v54, %v1992_v53 }
 0xc53   : > { %v1995_v44 = vrot.slane %v1994_v13, 1 }
 0xc55   : > { %v1996_v43 = vadd.f32 %v1995_v44, %v1994_v13 }
 0xc57   : > { %2729 = vrcp.f32 %v1996_v43 }
 0xc61   : > { %v2730_v45 = vpop.eup %2729 }
 0xc62   : > { %v1998_v20 = vmul.f32 %v2730_v45, %v1986_v47  ;;  %v1999_v32 = vmul.f32 %v2730_v45, %v1987_v49 }
 0xc64   : > { %2002 = vperm.xlu1 %2506, %v1998_v20  }
 0xc68   : > { %2007 = vperm.xlu1 %2506, %v1999_v32  }
 0xce3   : > { %v2003_v36 = vpop.permute.xlu1 %2002 }
 0xce4   : > { %v2010_v34 = vmul.f32 %v2003_v36, %v3677_v23 }
 0xce7   : > { %v2008_v18 = vpop.permute.xlu1 %2007 }
 0xce8   : > { %v2011_v31 = vmul.f32 %v2008_v18, %v3681_v21 }
 0xcea   : > { %v2012_v35 = vadd.f32 %v2011_v31, %v2010_v34 }
 0xcec   : > { %v2013_v39 = vrot.slane %v2012_v35, 4 }
 0xcee   : > { %v2014_v37 = vadd.f32 %v2013_v39, %v2012_v35 }
 0xcf0   : > { %v2015_v27 = vrot.slane %v2014_v37, 2 }
 0xcf2   : > { %v2016_v26 = vadd.f32 %v2015_v27, %v2014_v37 }
 0xcf4   : > { %v2017_v30 = vrot.slane %v2016_v26, 1 }
 0xcf6   : > { %v2018_v17 = vadd.f32 %v2017_v30, %v2016_v26 }
 0xcf8   : > { %2019 = vst [vmem:[%s382_s14] sm:$0x1] %v2018_v17 }
 0xcf9   : > { %2892 = shalt.err (!%p2889_p9)
}
 0xcfa   : > { %s2893_s16 = scalar_lea.hbm %s3700_s22, 16  ;;  %s2897_s26 = scalar_lea.hbm %s3751_s8, 64 }
 0xcfb   : > { %p2894_p12 = scmp.ne.s32.totalorder %s3700_s22, %s2893_s16  ;;  %p2898_p10 = scmp.lt.u32.totalorder %s3700_s22, %s3751_s8 }
 0xcfc   : > { %p2899_p1 = scmp.lt.u32.totalorder %s2897_s26, %s2893_s16  ;;  %p2901_p4 = scmp.lt.u32.totalorder %s2893_s16, %s3700_s22 }
 0xcfd   : > { %p2895_p0 = pnand %p2894_p12, %p3128_p8 }
 0xcfe   : > { %p2900_p2 = por %p2899_p1, %p2898_p10 }
 0xcff   : > { %p2896_p5 = pneg %p2895_p0 }
 0xd00   : > { %p2902_p6 = por %p2901_p4, %p2900_p2 }
 0xd02   : > { %p2903_p11 = pnand %p2902_p6, %p2896_p5 }
 0xd04   : > { %2906 = shalt.err (!%p2903_p11)
}
 0xd05   : > { %2442 = dma.vmem_to_hbm [thread:$0]  (%p3128_p8), %s3702_s11, 16, %s3700_s22, %s2021_s23  }
 0xd06 PF: > { %p2464_p13 = scmp.ge.s32.totalorder %s2949_s10, 2  ;;  %s2045_s15 = sand.u32 1, %s2937_s29  }
 0xd07   : > { %p3968_p3 = scmp.ne.s32.totalorder %s3845_s13, 0  ;;  %s2046_s20 = scalar_lea.sflag [#allocation5], %s2045_s15 }
 0xd09   : > { %p2456_p7 = pnand %p2464_p13, %p3968_p3 }
 0xd0b   : > { %2932 = dma.done.wait (!%p2456_p7), %s2046_s20, 16  }
 0xd0c   : > { %2934 = vsyncadd (!%p2456_p7), %s2046_s20, 4294967280  ;;  %p23_p9 = scmp.ge.s32.totalorder %s3115_s21, 6   ;;  %s3969_s29 = smov %s2941_s30 }
 0xd0d   : > { %s3970_s30 = smov %s2945_s9  ;;  %s3971_s9 = smov %s3124_s24 }
 0xd0e   : > { %s3972_s10 = smov %s3115_s21  ;;  %25 = sbr.rel (!%p23_p9) target bundleno = 8 (0x8), region = 114 }
 0xd15   :  { %2050 = vsyncpa [#allocation4], 1 }
 0xd16   :  { %2052 = vsyncpa [#allocation4 + $0x1], 1 }
 0xd17   :  { %2053 = vsyncpa [#allocation7], 1 }
 0xd18   :  { %2054 = vsyncpa [#allocation5], 1 }
 0xd19   :  { %2056 = vsyncpa [#allocation5 + $0x1], 1 }

</bundles_post_ra>
